<compile_context>
chip_gen: v5e
topology: v5e:2x2
jax: 0.10.0
libtpu: 0.0.40
codegen_flags: <defaults>
</compile_context>

<pallas_src>
import functools

import jax
import jax.numpy as jnp
from jax.experimental import pallas as pl
from jax.experimental.pallas import tpu as pltpu


def _round_up(n, m=16):
    return (n + m - 1) // m * m


def _lstm_rnn_kernel(x_ref, w_ref, s_ref, out_ref, *,
                     num_layers, hidden_size, input_size, num_class,
                     off_wih0, off_whh0, off_fused, off_wc):
    """Full multi-layer LSTM + classifier + softmax in one kernel invocation.

    x_ref: (seq_len, input_size) f32
    w_ref: bf16 weight slab (rows x 4H), rows are:
             [off_wih0 : +input_size)  W_ih layer 0 (transposed, gate order i,f,g,o)
             [off_whh0 : +H)           W_hh layer 0
             [off_fused[l-1] : +2H)    [W_ih | W_hh] fused, layers l >= 1
             [off_wc  : +H)            classifier weight, cols >= num_class are zero
           g-gate columns [2H:3H) are pre-scaled by 2 (tanh-as-sigmoid trick).
    s_ref: f32 slab (3L+1, 4H):
             rows [0:L)    b_ih + b_hh per layer (g columns pre-scaled by 2)
             rows [L:2L)   h0 in cols [0:H)
             rows [2L:3L)  c0 in cols [0:H)
             row  [3L]     classifier bias in cols [0:num_class)
    out_ref: (1, num_class) f32 softmax probabilities
    """
    H = hidden_size
    L = num_layers
    C = num_class
    seq_len = x_ref.shape[0]

    # ---- weights loaded once, vreg/VMEM resident across the unrolled recurrence ----
    wih0 = w_ref[off_wih0:off_wih0 + input_size, :]                    # (in, 4H) bf16
    whh0 = w_ref[off_whh0:off_whh0 + H, :]                             # (H, 4H) bf16
    w_fused = [w_ref[off_fused[l - 1]:off_fused[l - 1] + 2 * H, :]     # (2H, 4H) bf16
               for l in range(1, L)]
    wc = w_ref[off_wc:off_wc + H, :]                                   # (H, 4H) bf16

    b = [s_ref[l:l + 1, :] for l in range(L)]                          # (1, 4H) f32
    h = [s_ref[L + l:L + l + 1, 0:H] for l in range(L)]                # (1, H)  f32
    c = [s_ref[2 * L + l:2 * L + l + 1, 0:H] for l in range(L)]        # (1, H)  f32
    bc = s_ref[3 * L:3 * L + 1, 0:C]                                   # (1, C)  f32

    # ---- layer-0 input projection hoisted over all timesteps (off critical path) ----
    x_bf = x_ref[...].astype(jnp.bfloat16)                             # (seq, in)
    gates0_all = jnp.dot(x_bf, wih0,
                         preferred_element_type=jnp.float32) + b[0]    # (seq, 4H) f32

    def cell_step(gates, c_prev):
        # Single full-width sigmoid (one EUP op on one f32 vreg); g columns were
        # pre-scaled by 2 at init, so tanh(z_g) == 2*sigmoid(2*z_g) - 1.
        s = jax.nn.sigmoid(gates)                                      # (1, 4H) f32
        i_g = s[:, 0 * H:1 * H]
        f_g = s[:, 1 * H:2 * H]
        g_g = 2.0 * s[:, 2 * H:3 * H] - 1.0
        o_g = s[:, 3 * H:4 * H]
        c_new = f_g * c_prev + i_g * g_g
        h_new = o_g * jnp.tanh(c_new)
        return h_new, c_new

    # ---- wavefront recurrence: t outer, layer inner (seq_len, L compile-time) ----
    for t in range(seq_len):
        # layer 0: hoisted input projection row + recurrent matmul
        gates = gates0_all[t:t + 1, :] + jnp.dot(
            h[0].astype(jnp.bfloat16), whh0, preferred_element_type=jnp.float32)
        h[0], c[0] = cell_step(gates, c[0])
        # layers >= 1: fused [W_ih | W_hh] with concat([h_below_t, h_own_{t-1}])
        for l in range(1, L):
            hh = jnp.concatenate([h[l - 1], h[l]], axis=1).astype(jnp.bfloat16)
            gates = jnp.dot(hh, w_fused[l - 1],
                            preferred_element_type=jnp.float32) + b[l]
            h[l], c[l] = cell_step(gates, c[l])

    # ---- classifier on last timestep of top layer + exact softmax (runs once) ----
    logits = jnp.dot(h[L - 1].astype(jnp.bfloat16), wc,
                     preferred_element_type=jnp.float32)[:, 0:C] + bc  # (1, C) f32
    m = jnp.max(logits, axis=1, keepdims=True)
    e = jnp.exp(logits - m)
    out_ref[...] = (e / jnp.sum(e, axis=1, keepdims=True)).astype(out_ref.dtype)


def rnn_forward(x, params, *, num_layers, hidden_size, num_class):
    """x: (seq_len, 1, input_size) f32 -> (1, num_class) softmax probabilities."""
    seq_len, batch, input_size = x.shape
    assert batch == 1, "module's h_0/c_0 shape (num_layers, 1, H) implies batch=1"
    x2 = x[:, 0, :]
    offs = params["offsets"]

    kernel = functools.partial(
        _lstm_rnn_kernel,
        num_layers=num_layers, hidden_size=hidden_size,
        input_size=input_size, num_class=num_class,
        off_wih0=offs["wih0"], off_whh0=offs["whh0"],
        off_fused=offs["fused"], off_wc=offs["wc"])

    vmem = pl.BlockSpec(memory_space=pltpu.MemorySpace.VMEM)

    # NOTE(v7x): everything is whole-array VMEM resident (<64 KiB at these sizes);
    # if hidden_size / seq_len are scaled up, re-derive against the 32 MiB default
    # scoped VMEM and add a grid over sequence chunks / partial unroll.
    # TODO(synk): with multiple independent sequences, add a "parallel" grid axis
    # over sequences (or fold batch into M) to use both v7x TensorCores.
    out = pl.pallas_call(
        kernel,
        out_shape=jax.ShapeDtypeStruct((1, num_class), jnp.float32),
        in_specs=[vmem, vmem, vmem],
        out_specs=vmem,
    )(x2, params["wslab"], params["sslab"])
    return out


def _orthogonal_rows(key, rows, cols):
    # Deterministic stand-in for nn.init.orthogonal_ on (rows, cols), rows <= cols.
    a = jax.random.normal(key, (cols, rows), dtype=jnp.float32)
    q, r = jnp.linalg.qr(a)
    q = q * jnp.sign(jnp.diag(r))
    return q.T  # (rows, cols), orthonormal rows


def _scale_g(w_t, H):
    # Scale the g-gate block (columns [2H:3H)) by 2: tanh-as-sigmoid trick.
    return w_t.at[..., 2 * H:3 * H].multiply(2.0)


def make_params(key, *, input_size, hidden_size, num_layers, num_class):
    H, L, C = hidden_size, num_layers, num_class
    assert 4 * H >= C, "classifier packs into the 4H-wide slab"
    scale = 1.0 / jnp.sqrt(jnp.float32(H))
    keys = jax.random.split(key, 5 * num_layers + 4)

    def u(k, shape):
        return jax.random.uniform(k, shape, jnp.float32, -scale, scale)

    wih_t, whh_t, b = [], [], []
    for l in range(L):
        in_l = input_size if l == 0 else H
        wih_t.append(u(keys[5 * l + 0], (4 * H, in_l)).T)   # (in_l, 4H), gate order i,f,g,o
        whh_t.append(u(keys[5 * l + 1], (4 * H, H)).T)      # (H, 4H)
        b.append(u(keys[5 * l + 2], (4 * H,)) + u(keys[5 * l + 3], (4 * H,)))

    # TODO(synk): the PyTorch forward draws fresh random orthogonal h_0/c_0 every
    # call; here they are a deterministic orthogonal stand-in built once from the key.
    kh, kc, kw, kb = jax.random.split(keys[-1], 4)
    h0 = _orthogonal_rows(kh, L, H)                         # (L, H)
    c0 = _orthogonal_rows(kc, L, H)                         # (L, H)
    wc = u(kw, (C, H)).T                                    # (H, C)
    bc = u(kb, (C,))                                        # (C,)

    # Fold the tanh-as-sigmoid x2 scaling of the g gate into weights AND bias.
    wih_t = [_scale_g(w, H) for w in wih_t]
    whh_t = [_scale_g(w, H) for w in whh_t]
    b = [_scale_g(bb, H) for bb in b]

    # ---- bf16 weight slab (cast once at init, not per forward call) ----
    off_wih0 = 0
    off_whh0 = _round_up(input_size)
    cur = off_whh0 + _round_up(H)
    off_fused = []
    for l in range(1, L):
        off_fused.append(cur)
        cur += 2 * H
    off_wc = cur
    total_rows = _round_up(off_wc + H)

    wslab = jnp.zeros((total_rows, 4 * H), jnp.float32)
    wslab = wslab.at[off_wih0:off_wih0 + input_size, :].set(wih_t[0])
    wslab = wslab.at[off_whh0:off_whh0 + H, :].set(whh_t[0])
    for l in range(1, L):
        o = off_fused[l - 1]
        wslab = wslab.at[o:o + H, :].set(wih_t[l])           # rows [0:H)  : W_ih
        wslab = wslab.at[o + H:o + 2 * H, :].set(whh_t[l])   # rows [H:2H) : W_hh
    wslab = wslab.at[off_wc:off_wc + H, 0:C].set(wc)
    wslab = wslab.astype(jnp.bfloat16)

    # ---- f32 bias/state slab: [b (L) | h0 (L) | c0 (L) | bc (1)] rows x 4H cols ----
    sslab = jnp.zeros((3 * L + 1, 4 * H), jnp.float32)
    sslab = sslab.at[0:L, :].set(jnp.stack(b, axis=0))
    sslab = sslab.at[L:2 * L, 0:H].set(h0)
    sslab = sslab.at[2 * L:3 * L, 0:H].set(c0)
    sslab = sslab.at[3 * L, 0:C].set(bc)

    return {
        "wslab": wslab,
        "sslab": sslab,
        "offsets": {"wih0": off_wih0, "whh0": off_whh0,
                    "fused": tuple(off_fused), "wc": off_wc},
    }


if __name__ == "__main__":
    input_size, hidden_size, num_layers, num_class = 16, 32, 2, 10
    seq_len, batch = 8, 1   # batch fixed to 1 by the module's h_0/c_0 shape

    key = jax.random.PRNGKey(0)
    kx, kp = jax.random.split(key)
    x = jax.random.normal(kx, (seq_len, batch, input_size), dtype=jnp.float32)
    params = make_params(kp, input_size=input_size, hidden_size=hidden_size,
                         num_layers=num_layers, num_class=num_class)

    out = rnn_forward(x, params, num_layers=num_layers,
                      hidden_size=hidden_size, num_class=num_class)
    out = jax.block_until_ready(out)

    assert out.shape == (1, num_class)
    assert bool(jnp.isfinite(out).all())
    assert abs(float(out.sum()) - 1.0) < 1e-3   # exact softmax normalization
    print("KERNEL_OK")
</pallas_src>

<mosaic_0001>
module attributes {stable_mosaic.version = 11 : i64} {
  func.func @_lstm_rnn_kernel(%arg0: memref<8x16xf32, #tpu.memory_space<vmem>>, %arg1: memref<144x128xbf16, #tpu.memory_space<vmem>>, %arg2: memref<7x128xf32, #tpu.memory_space<vmem>>, %arg3: memref<1x10xf32, #tpu.memory_space<vmem>>) attributes {dimension_semantics = [], scalar_prefetch = 0 : i64, scratch_operands = 0 : i64, tpu.core_type = #tpu.core_type<tc>} {
    %c0 = arith.constant 0 : index
    %c0_0 = arith.constant 0 : index
    %0 = vector.load %arg1[%c0, %c0_0] : memref<144x128xbf16, #tpu.memory_space<vmem>>, vector<16x128xbf16>
    %c16 = arith.constant 16 : index
    %c0_1 = arith.constant 0 : index
    %1 = vector.load %arg1[%c16, %c0_1] : memref<144x128xbf16, #tpu.memory_space<vmem>>, vector<32x128xbf16>
    %c48 = arith.constant 48 : index
    %c0_2 = arith.constant 0 : index
    %2 = vector.load %arg1[%c48, %c0_2] : memref<144x128xbf16, #tpu.memory_space<vmem>>, vector<64x128xbf16>
    %c112 = arith.constant 112 : index
    %c0_3 = arith.constant 0 : index
    %3 = vector.load %arg1[%c112, %c0_3] : memref<144x128xbf16, #tpu.memory_space<vmem>>, vector<32x128xbf16>
    %c0_4 = arith.constant 0 : index
    %c0_5 = arith.constant 0 : index
    %4 = vector.load %arg2[%c0_4, %c0_5] : memref<7x128xf32, #tpu.memory_space<vmem>>, vector<1x128xf32>
    %c1 = arith.constant 1 : index
    %c0_6 = arith.constant 0 : index
    %5 = vector.load %arg2[%c1, %c0_6] : memref<7x128xf32, #tpu.memory_space<vmem>>, vector<1x128xf32>
    %c2 = arith.constant 2 : index
    %c0_7 = arith.constant 0 : index
    %6 = vector.load %arg2[%c2, %c0_7] : memref<7x128xf32, #tpu.memory_space<vmem>>, vector<1x32xf32>
    %c3 = arith.constant 3 : index
    %c0_8 = arith.constant 0 : index
    %7 = vector.load %arg2[%c3, %c0_8] : memref<7x128xf32, #tpu.memory_space<vmem>>, vector<1x32xf32>
    %c4 = arith.constant 4 : index
    %c0_9 = arith.constant 0 : index
    %8 = vector.load %arg2[%c4, %c0_9] : memref<7x128xf32, #tpu.memory_space<vmem>>, vector<1x32xf32>
    %c5 = arith.constant 5 : index
    %c0_10 = arith.constant 0 : index
    %9 = vector.load %arg2[%c5, %c0_10] : memref<7x128xf32, #tpu.memory_space<vmem>>, vector<1x32xf32>
    %c6 = arith.constant 6 : index
    %c0_11 = arith.constant 0 : index
    %10 = vector.load %arg2[%c6, %c0_11] : memref<7x128xf32, #tpu.memory_space<vmem>>, vector<1x10xf32>
    %c0_12 = arith.constant 0 : index
    %c0_13 = arith.constant 0 : index
    %11 = vector.load %arg0[%c0_12, %c0_13] : memref<8x16xf32, #tpu.memory_space<vmem>>, vector<8x16xf32>
    %12 = arith.truncf %11 : vector<8x16xf32> to vector<8x16xbf16>
    %cst = arith.constant dense<0.000000e+00> : vector<8x128xf32>
    %13 = tpu.matmul %12, %0, %cst {dimension_numbers = #tpu.dot_dimension_numbers<[1], [0], [0], [1], [0, 0, 1, 1], [], []>} : vector<8x16xbf16>, vector<16x128xbf16>, vector<8x128xf32> -> vector<8x128xf32>
    %14 = vector.broadcast %4 : vector<1x128xf32> to vector<8x128xf32>
    %15 = arith.addf %13, %14 : vector<8x128xf32>
    %16 = vector.extract_strided_slice %15 {offsets = [0, 0], sizes = [1, 128], strides = [1, 1]} : vector<8x128xf32> to vector<1x128xf32>
    %17 = arith.truncf %6 : vector<1x32xf32> to vector<1x32xbf16>
    %cst_14 = arith.constant dense<0.000000e+00> : vector<1x128xf32>
    %18 = tpu.matmul %17, %1, %cst_14 {dimension_numbers = #tpu.dot_dimension_numbers<[1], [0], [0], [1], [0, 0, 1, 1], [], []>} : vector<1x32xbf16>, vector<32x128xbf16>, vector<1x128xf32> -> vector<1x128xf32>
    %19 = arith.addf %16, %18 : vector<1x128xf32>
    %20 = arith.negf %19 : vector<1x128xf32>
    %21 = math.exp %20 : vector<1x128xf32>
    %cst_15 = arith.constant 1.000000e+00 : f32
    %22 = vector.broadcast %cst_15 : f32 to vector<1x128xf32>
    %23 = arith.addf %22, %21 : vector<1x128xf32>
    %24 = arith.divf %22, %23 : vector<1x128xf32>
    %25 = vector.extract_strided_slice %24 {offsets = [0, 0], sizes = [1, 32], strides = [1, 1]} : vector<1x128xf32> to vector<1x32xf32>
    %26 = vector.extract_strided_slice %24 {offsets = [0, 32], sizes = [1, 32], strides = [1, 1]} : vector<1x128xf32> to vector<1x32xf32>
    %27 = vector.extract_strided_slice %24 {offsets = [0, 64], sizes = [1, 32], strides = [1, 1]} : vector<1x128xf32> to vector<1x32xf32>
    %cst_16 = arith.constant 2.000000e+00 : f32
    %28 = vector.broadcast %cst_16 : f32 to vector<1x32xf32>
    %29 = arith.mulf %28, %27 : vector<1x32xf32>
    %cst_17 = arith.constant 1.000000e+00 : f32
    %30 = vector.broadcast %cst_17 : f32 to vector<1x32xf32>
    %31 = arith.subf %29, %30 : vector<1x32xf32>
    %32 = vector.extract_strided_slice %24 {offsets = [0, 96], sizes = [1, 32], strides = [1, 1]} : vector<1x128xf32> to vector<1x32xf32>
    %33 = arith.mulf %26, %8 : vector<1x32xf32>
    %34 = arith.mulf %25, %31 : vector<1x32xf32>
    %35 = arith.addf %33, %34 : vector<1x32xf32>
    %36 = math.tanh %35 : vector<1x32xf32>
    %37 = arith.mulf %32, %36 : vector<1x32xf32>
    %38 = tpu.concatenate %37, %7 in 1 : vector<1x32xf32>, vector<1x32xf32> -> vector<1x64xf32>
    %39 = arith.truncf %38 : vector<1x64xf32> to vector<1x64xbf16>
    %cst_18 = arith.constant dense<0.000000e+00> : vector<1x128xf32>
    %40 = tpu.matmul %39, %2, %cst_18 {dimension_numbers = #tpu.dot_dimension_numbers<[1], [0], [0], [1], [0, 0, 1, 1], [], []>} : vector<1x64xbf16>, vector<64x128xbf16>, vector<1x128xf32> -> vector<1x128xf32>
    %41 = arith.addf %40, %5 : vector<1x128xf32>
    %42 = arith.negf %41 : vector<1x128xf32>
    %43 = math.exp %42 : vector<1x128xf32>
    %cst_19 = arith.constant 1.000000e+00 : f32
    %44 = vector.broadcast %cst_19 : f32 to vector<1x128xf32>
    %45 = arith.addf %44, %43 : vector<1x128xf32>
    %46 = arith.divf %44, %45 : vector<1x128xf32>
    %47 = vector.extract_strided_slice %46 {offsets = [0, 0], sizes = [1, 32], strides = [1, 1]} : vector<1x128xf32> to vector<1x32xf32>
    %48 = vector.extract_strided_slice %46 {offsets = [0, 32], sizes = [1, 32], strides = [1, 1]} : vector<1x128xf32> to vector<1x32xf32>
    %49 = vector.extract_strided_slice %46 {offsets = [0, 64], sizes = [1, 32], strides = [1, 1]} : vector<1x128xf32> to vector<1x32xf32>
    %cst_20 = arith.constant 2.000000e+00 : f32
    %50 = vector.broadcast %cst_20 : f32 to vector<1x32xf32>
    %51 = arith.mulf %50, %49 : vector<1x32xf32>
    %cst_21 = arith.constant 1.000000e+00 : f32
    %52 = vector.broadcast %cst_21 : f32 to vector<1x32xf32>
    %53 = arith.subf %51, %52 : vector<1x32xf32>
    %54 = vector.extract_strided_slice %46 {offsets = [0, 96], sizes = [1, 32], strides = [1, 1]} : vector<1x128xf32> to vector<1x32xf32>
    %55 = arith.mulf %48, %9 : vector<1x32xf32>
    %56 = arith.mulf %47, %53 : vector<1x32xf32>
    %57 = arith.addf %55, %56 : vector<1x32xf32>
    %58 = math.tanh %57 : vector<1x32xf32>
    %59 = arith.mulf %54, %58 : vector<1x32xf32>
    %60 = vector.extract_strided_slice %15 {offsets = [1, 0], sizes = [1, 128], strides = [1, 1]} : vector<8x128xf32> to vector<1x128xf32>
    %61 = arith.truncf %37 : vector<1x32xf32> to vector<1x32xbf16>
    %cst_22 = arith.constant dense<0.000000e+00> : vector<1x128xf32>
    %62 = tpu.matmul %61, %1, %cst_22 {dimension_numbers = #tpu.dot_dimension_numbers<[1], [0], [0], [1], [0, 0, 1, 1], [], []>} : vector<1x32xbf16>, vector<32x128xbf16>, vector<1x128xf32> -> vector<1x128xf32>
    %63 = arith.addf %60, %62 : vector<1x128xf32>
    %64 = arith.negf %63 : vector<1x128xf32>
    %65 = math.exp %64 : vector<1x128xf32>
    %cst_23 = arith.constant 1.000000e+00 : f32
    %66 = vector.broadcast %cst_23 : f32 to vector<1x128xf32>
    %67 = arith.addf %66, %65 : vector<1x128xf32>
    %68 = arith.divf %66, %67 : vector<1x128xf32>
    %69 = vector.extract_strided_slice %68 {offsets = [0, 0], sizes = [1, 32], strides = [1, 1]} : vector<1x128xf32> to vector<1x32xf32>
    %70 = vector.extract_strided_slice %68 {offsets = [0, 32], sizes = [1, 32], strides = [1, 1]} : vector<1x128xf32> to vector<1x32xf32>
    %71 = vector.extract_strided_slice %68 {offsets = [0, 64], sizes = [1, 32], strides = [1, 1]} : vector<1x128xf32> to vector<1x32xf32>
    %cst_24 = arith.constant 2.000000e+00 : f32
    %72 = vector.broadcast %cst_24 : f32 to vector<1x32xf32>
    %73 = arith.mulf %72, %71 : vector<1x32xf32>
    %cst_25 = arith.constant 1.000000e+00 : f32
    %74 = vector.broadcast %cst_25 : f32 to vector<1x32xf32>
    %75 = arith.subf %73, %74 : vector<1x32xf32>
    %76 = vector.extract_strided_slice %68 {offsets = [0, 96], sizes = [1, 32], strides = [1, 1]} : vector<1x128xf32> to vector<1x32xf32>
    %77 = arith.mulf %70, %35 : vector<1x32xf32>
    %78 = arith.mulf %69, %75 : vector<1x32xf32>
    %79 = arith.addf %77, %78 : vector<1x32xf32>
    %80 = math.tanh %79 : vector<1x32xf32>
    %81 = arith.mulf %76, %80 : vector<1x32xf32>
    %82 = tpu.concatenate %81, %59 in 1 : vector<1x32xf32>, vector<1x32xf32> -> vector<1x64xf32>
    %83 = arith.truncf %82 : vector<1x64xf32> to vector<1x64xbf16>
    %cst_26 = arith.constant dense<0.000000e+00> : vector<1x128xf32>
    %84 = tpu.matmul %83, %2, %cst_26 {dimension_numbers = #tpu.dot_dimension_numbers<[1], [0], [0], [1], [0, 0, 1, 1], [], []>} : vector<1x64xbf16>, vector<64x128xbf16>, vector<1x128xf32> -> vector<1x128xf32>
    %85 = arith.addf %84, %5 : vector<1x128xf32>
    %86 = arith.negf %85 : vector<1x128xf32>
    %87 = math.exp %86 : vector<1x128xf32>
    %cst_27 = arith.constant 1.000000e+00 : f32
    %88 = vector.broadcast %cst_27 : f32 to vector<1x128xf32>
    %89 = arith.addf %88, %87 : vector<1x128xf32>
    %90 = arith.divf %88, %89 : vector<1x128xf32>
    %91 = vector.extract_strided_slice %90 {offsets = [0, 0], sizes = [1, 32], strides = [1, 1]} : vector<1x128xf32> to vector<1x32xf32>
    %92 = vector.extract_strided_slice %90 {offsets = [0, 32], sizes = [1, 32], strides = [1, 1]} : vector<1x128xf32> to vector<1x32xf32>
    %93 = vector.extract_strided_slice %90 {offsets = [0, 64], sizes = [1, 32], strides = [1, 1]} : vector<1x128xf32> to vector<1x32xf32>
    %cst_28 = arith.constant 2.000000e+00 : f32
    %94 = vector.broadcast %cst_28 : f32 to vector<1x32xf32>
    %95 = arith.mulf %94, %93 : vector<1x32xf32>
    %cst_29 = arith.constant 1.000000e+00 : f32
    %96 = vector.broadcast %cst_29 : f32 to vector<1x32xf32>
    %97 = arith.subf %95, %96 : vector<1x32xf32>
    %98 = vector.extract_strided_slice %90 {offsets = [0, 96], sizes = [1, 32], strides = [1, 1]} : vector<1x128xf32> to vector<1x32xf32>
    %99 = arith.mulf %92, %57 : vector<1x32xf32>
    %100 = arith.mulf %91, %97 : vector<1x32xf32>
    %101 = arith.addf %99, %100 : vector<1x32xf32>
    %102 = math.tanh %101 : vector<1x32xf32>
    %103 = arith.mulf %98, %102 : vector<1x32xf32>
    %104 = vector.extract_strided_slice %15 {offsets = [2, 0], sizes = [1, 128], strides = [1, 1]} : vector<8x128xf32> to vector<1x128xf32>
    %105 = arith.truncf %81 : vector<1x32xf32> to vector<1x32xbf16>
    %cst_30 = arith.constant dense<0.000000e+00> : vector<1x128xf32>
    %106 = tpu.matmul %105, %1, %cst_30 {dimension_numbers = #tpu.dot_dimension_numbers<[1], [0], [0], [1], [0, 0, 1, 1], [], []>} : vector<1x32xbf16>, vector<32x128xbf16>, vector<1x128xf32> -> vector<1x128xf32>
    %107 = arith.addf %104, %106 : vector<1x128xf32>
    %108 = arith.negf %107 : vector<1x128xf32>
    %109 = math.exp %108 : vector<1x128xf32>
    %cst_31 = arith.constant 1.000000e+00 : f32
    %110 = vector.broadcast %cst_31 : f32 to vector<1x128xf32>
    %111 = arith.addf %110, %109 : vector<1x128xf32>
    %112 = arith.divf %110, %111 : vector<1x128xf32>
    %113 = vector.extract_strided_slice %112 {offsets = [0, 0], sizes = [1, 32], strides = [1, 1]} : vector<1x128xf32> to vector<1x32xf32>
    %114 = vector.extract_strided_slice %112 {offsets = [0, 32], sizes = [1, 32], strides = [1, 1]} : vector<1x128xf32> to vector<1x32xf32>
    %115 = vector.extract_strided_slice %112 {offsets = [0, 64], sizes = [1, 32], strides = [1, 1]} : vector<1x128xf32> to vector<1x32xf32>
    %cst_32 = arith.constant 2.000000e+00 : f32
    %116 = vector.broadcast %cst_32 : f32 to vector<1x32xf32>
    %117 = arith.mulf %116, %115 : vector<1x32xf32>
    %cst_33 = arith.constant 1.000000e+00 : f32
    %118 = vector.broadcast %cst_33 : f32 to vector<1x32xf32>
    %119 = arith.subf %117, %118 : vector<1x32xf32>
    %120 = vector.extract_strided_slice %112 {offsets = [0, 96], sizes = [1, 32], strides = [1, 1]} : vector<1x128xf32> to vector<1x32xf32>
    %121 = arith.mulf %114, %79 : vector<1x32xf32>
    %122 = arith.mulf %113, %119 : vector<1x32xf32>
    %123 = arith.addf %121, %122 : vector<1x32xf32>
    %124 = math.tanh %123 : vector<1x32xf32>
    %125 = arith.mulf %120, %124 : vector<1x32xf32>
    %126 = tpu.concatenate %125, %103 in 1 : vector<1x32xf32>, vector<1x32xf32> -> vector<1x64xf32>
    %127 = arith.truncf %126 : vector<1x64xf32> to vector<1x64xbf16>
    %cst_34 = arith.constant dense<0.000000e+00> : vector<1x128xf32>
    %128 = tpu.matmul %127, %2, %cst_34 {dimension_numbers = #tpu.dot_dimension_numbers<[1], [0], [0], [1], [0, 0, 1, 1], [], []>} : vector<1x64xbf16>, vector<64x128xbf16>, vector<1x128xf32> -> vector<1x128xf32>
    %129 = arith.addf %128, %5 : vector<1x128xf32>
    %130 = arith.negf %129 : vector<1x128xf32>
    %131 = math.exp %130 : vector<1x128xf32>
    %cst_35 = arith.constant 1.000000e+00 : f32
    %132 = vector.broadcast %cst_35 : f32 to vector<1x128xf32>
    %133 = arith.addf %132, %131 : vector<1x128xf32>
    %134 = arith.divf %132, %133 : vector<1x128xf32>
    %135 = vector.extract_strided_slice %134 {offsets = [0, 0], sizes = [1, 32], strides = [1, 1]} : vector<1x128xf32> to vector<1x32xf32>
    %136 = vector.extract_strided_slice %134 {offsets = [0, 32], sizes = [1, 32], strides = [1, 1]} : vector<1x128xf32> to vector<1x32xf32>
    %137 = vector.extract_strided_slice %134 {offsets = [0, 64], sizes = [1, 32], strides = [1, 1]} : vector<1x128xf32> to vector<1x32xf32>
    %cst_36 = arith.constant 2.000000e+00 : f32
    %138 = vector.broadcast %cst_36 : f32 to vector<1x32xf32>
    %139 = arith.mulf %138, %137 : vector<1x32xf32>
    %cst_37 = arith.constant 1.000000e+00 : f32
    %140 = vector.broadcast %cst_37 : f32 to vector<1x32xf32>
    %141 = arith.subf %139, %140 : vector<1x32xf32>
    %142 = vector.extract_strided_slice %134 {offsets = [0, 96], sizes = [1, 32], strides = [1, 1]} : vector<1x128xf32> to vector<1x32xf32>
    %143 = arith.mulf %136, %101 : vector<1x32xf32>
    %144 = arith.mulf %135, %141 : vector<1x32xf32>
    %145 = arith.addf %143, %144 : vector<1x32xf32>
    %146 = math.tanh %145 : vector<1x32xf32>
    %147 = arith.mulf %142, %146 : vector<1x32xf32>
    %148 = vector.extract_strided_slice %15 {offsets = [3, 0], sizes = [1, 128], strides = [1, 1]} : vector<8x128xf32> to vector<1x128xf32>
    %149 = arith.truncf %125 : vector<1x32xf32> to vector<1x32xbf16>
    %cst_38 = arith.constant dense<0.000000e+00> : vector<1x128xf32>
    %150 = tpu.matmul %149, %1, %cst_38 {dimension_numbers = #tpu.dot_dimension_numbers<[1], [0], [0], [1], [0, 0, 1, 1], [], []>} : vector<1x32xbf16>, vector<32x128xbf16>, vector<1x128xf32> -> vector<1x128xf32>
    %151 = arith.addf %148, %150 : vector<1x128xf32>
    %152 = arith.negf %151 : vector<1x128xf32>
    %153 = math.exp %152 : vector<1x128xf32>
    %cst_39 = arith.constant 1.000000e+00 : f32
    %154 = vector.broadcast %cst_39 : f32 to vector<1x128xf32>
    %155 = arith.addf %154, %153 : vector<1x128xf32>
    %156 = arith.divf %154, %155 : vector<1x128xf32>
    %157 = vector.extract_strided_slice %156 {offsets = [0, 0], sizes = [1, 32], strides = [1, 1]} : vector<1x128xf32> to vector<1x32xf32>
    %158 = vector.extract_strided_slice %156 {offsets = [0, 32], sizes = [1, 32], strides = [1, 1]} : vector<1x128xf32> to vector<1x32xf32>
    %159 = vector.extract_strided_slice %156 {offsets = [0, 64], sizes = [1, 32], strides = [1, 1]} : vector<1x128xf32> to vector<1x32xf32>
    %cst_40 = arith.constant 2.000000e+00 : f32
    %160 = vector.broadcast %cst_40 : f32 to vector<1x32xf32>
    %161 = arith.mulf %160, %159 : vector<1x32xf32>
    %cst_41 = arith.constant 1.000000e+00 : f32
    %162 = vector.broadcast %cst_41 : f32 to vector<1x32xf32>
    %163 = arith.subf %161, %162 : vector<1x32xf32>
    %164 = vector.extract_strided_slice %156 {offsets = [0, 96], sizes = [1, 32], strides = [1, 1]} : vector<1x128xf32> to vector<1x32xf32>
    %165 = arith.mulf %158, %123 : vector<1x32xf32>
    %166 = arith.mulf %157, %163 : vector<1x32xf32>
    %167 = arith.addf %165, %166 : vector<1x32xf32>
    %168 = math.tanh %167 : vector<1x32xf32>
    %169 = arith.mulf %164, %168 : vector<1x32xf32>
    %170 = tpu.concatenate %169, %147 in 1 : vector<1x32xf32>, vector<1x32xf32> -> vector<1x64xf32>
    %171 = arith.truncf %170 : vector<1x64xf32> to vector<1x64xbf16>
    %cst_42 = arith.constant dense<0.000000e+00> : vector<1x128xf32>
    %172 = tpu.matmul %171, %2, %cst_42 {dimension_numbers = #tpu.dot_dimension_numbers<[1], [0], [0], [1], [0, 0, 1, 1], [], []>} : vector<1x64xbf16>, vector<64x128xbf16>, vector<1x128xf32> -> vector<1x128xf32>
    %173 = arith.addf %172, %5 : vector<1x128xf32>
    %174 = arith.negf %173 : vector<1x128xf32>
    %175 = math.exp %174 : vector<1x128xf32>
    %cst_43 = arith.constant 1.000000e+00 : f32
    %176 = vector.broadcast %cst_43 : f32 to vector<1x128xf32>
    %177 = arith.addf %176, %175 : vector<1x128xf32>
    %178 = arith.divf %176, %177 : vector<1x128xf32>
    %179 = vector.extract_strided_slice %178 {offsets = [0, 0], sizes = [1, 32], strides = [1, 1]} : vector<1x128xf32> to vector<1x32xf32>
    %180 = vector.extract_strided_slice %178 {offsets = [0, 32], sizes = [1, 32], strides = [1, 1]} : vector<1x128xf32> to vector<1x32xf32>
    %181 = vector.extract_strided_slice %178 {offsets = [0, 64], sizes = [1, 32], strides = [1, 1]} : vector<1x128xf32> to vector<1x32xf32>
    %cst_44 = arith.constant 2.000000e+00 : f32
    %182 = vector.broadcast %cst_44 : f32 to vector<1x32xf32>
    %183 = arith.mulf %182, %181 : vector<1x32xf32>
    %cst_45 = arith.constant 1.000000e+00 : f32
    %184 = vector.broadcast %cst_45 : f32 to vector<1x32xf32>
    %185 = arith.subf %183, %184 : vector<1x32xf32>
    %186 = vector.extract_strided_slice %178 {offsets = [0, 96], sizes = [1, 32], strides = [1, 1]} : vector<1x128xf32> to vector<1x32xf32>
    %187 = arith.mulf %180, %145 : vector<1x32xf32>
    %188 = arith.mulf %179, %185 : vector<1x32xf32>
    %189 = arith.addf %187, %188 : vector<1x32xf32>
    %190 = math.tanh %189 : vector<1x32xf32>
    %191 = arith.mulf %186, %190 : vector<1x32xf32>
    %192 = vector.extract_strided_slice %15 {offsets = [4, 0], sizes = [1, 128], strides = [1, 1]} : vector<8x128xf32> to vector<1x128xf32>
    %193 = arith.truncf %169 : vector<1x32xf32> to vector<1x32xbf16>
    %cst_46 = arith.constant dense<0.000000e+00> : vector<1x128xf32>
    %194 = tpu.matmul %193, %1, %cst_46 {dimension_numbers = #tpu.dot_dimension_numbers<[1], [0], [0], [1], [0, 0, 1, 1], [], []>} : vector<1x32xbf16>, vector<32x128xbf16>, vector<1x128xf32> -> vector<1x128xf32>
    %195 = arith.addf %192, %194 : vector<1x128xf32>
    %196 = arith.negf %195 : vector<1x128xf32>
    %197 = math.exp %196 : vector<1x128xf32>
    %cst_47 = arith.constant 1.000000e+00 : f32
    %198 = vector.broadcast %cst_47 : f32 to vector<1x128xf32>
    %199 = arith.addf %198, %197 : vector<1x128xf32>
    %200 = arith.divf %198, %199 : vector<1x128xf32>
    %201 = vector.extract_strided_slice %200 {offsets = [0, 0], sizes = [1, 32], strides = [1, 1]} : vector<1x128xf32> to vector<1x32xf32>
    %202 = vector.extract_strided_slice %200 {offsets = [0, 32], sizes = [1, 32], strides = [1, 1]} : vector<1x128xf32> to vector<1x32xf32>
    %203 = vector.extract_strided_slice %200 {offsets = [0, 64], sizes = [1, 32], strides = [1, 1]} : vector<1x128xf32> to vector<1x32xf32>
    %cst_48 = arith.constant 2.000000e+00 : f32
    %204 = vector.broadcast %cst_48 : f32 to vector<1x32xf32>
    %205 = arith.mulf %204, %203 : vector<1x32xf32>
    %cst_49 = arith.constant 1.000000e+00 : f32
    %206 = vector.broadcast %cst_49 : f32 to vector<1x32xf32>
    %207 = arith.subf %205, %206 : vector<1x32xf32>
    %208 = vector.extract_strided_slice %200 {offsets = [0, 96], sizes = [1, 32], strides = [1, 1]} : vector<1x128xf32> to vector<1x32xf32>
    %209 = arith.mulf %202, %167 : vector<1x32xf32>
    %210 = arith.mulf %201, %207 : vector<1x32xf32>
    %211 = arith.addf %209, %210 : vector<1x32xf32>
    %212 = math.tanh %211 : vector<1x32xf32>
    %213 = arith.mulf %208, %212 : vector<1x32xf32>
    %214 = tpu.concatenate %213, %191 in 1 : vector<1x32xf32>, vector<1x32xf32> -> vector<1x64xf32>
    %215 = arith.truncf %214 : vector<1x64xf32> to vector<1x64xbf16>
    %cst_50 = arith.constant dense<0.000000e+00> : vector<1x128xf32>
    %216 = tpu.matmul %215, %2, %cst_50 {dimension_numbers = #tpu.dot_dimension_numbers<[1], [0], [0], [1], [0, 0, 1, 1], [], []>} : vector<1x64xbf16>, vector<64x128xbf16>, vector<1x128xf32> -> vector<1x128xf32>
    %217 = arith.addf %216, %5 : vector<1x128xf32>
    %218 = arith.negf %217 : vector<1x128xf32>
    %219 = math.exp %218 : vector<1x128xf32>
    %cst_51 = arith.constant 1.000000e+00 : f32
    %220 = vector.broadcast %cst_51 : f32 to vector<1x128xf32>
    %221 = arith.addf %220, %219 : vector<1x128xf32>
    %222 = arith.divf %220, %221 : vector<1x128xf32>
    %223 = vector.extract_strided_slice %222 {offsets = [0, 0], sizes = [1, 32], strides = [1, 1]} : vector<1x128xf32> to vector<1x32xf32>
    %224 = vector.extract_strided_slice %222 {offsets = [0, 32], sizes = [1, 32], strides = [1, 1]} : vector<1x128xf32> to vector<1x32xf32>
    %225 = vector.extract_strided_slice %222 {offsets = [0, 64], sizes = [1, 32], strides = [1, 1]} : vector<1x128xf32> to vector<1x32xf32>
    %cst_52 = arith.constant 2.000000e+00 : f32
    %226 = vector.broadcast %cst_52 : f32 to vector<1x32xf32>
    %227 = arith.mulf %226, %225 : vector<1x32xf32>
    %cst_53 = arith.constant 1.000000e+00 : f32
    %228 = vector.broadcast %cst_53 : f32 to vector<1x32xf32>
    %229 = arith.subf %227, %228 : vector<1x32xf32>
    %230 = vector.extract_strided_slice %222 {offsets = [0, 96], sizes = [1, 32], strides = [1, 1]} : vector<1x128xf32> to vector<1x32xf32>
    %231 = arith.mulf %224, %189 : vector<1x32xf32>
    %232 = arith.mulf %223, %229 : vector<1x32xf32>
    %233 = arith.addf %231, %232 : vector<1x32xf32>
    %234 = math.tanh %233 : vector<1x32xf32>
    %235 = arith.mulf %230, %234 : vector<1x32xf32>
    %236 = vector.extract_strided_slice %15 {offsets = [5, 0], sizes = [1, 128], strides = [1, 1]} : vector<8x128xf32> to vector<1x128xf32>
    %237 = arith.truncf %213 : vector<1x32xf32> to vector<1x32xbf16>
    %cst_54 = arith.constant dense<0.000000e+00> : vector<1x128xf32>
    %238 = tpu.matmul %237, %1, %cst_54 {dimension_numbers = #tpu.dot_dimension_numbers<[1], [0], [0], [1], [0, 0, 1, 1], [], []>} : vector<1x32xbf16>, vector<32x128xbf16>, vector<1x128xf32> -> vector<1x128xf32>
    %239 = arith.addf %236, %238 : vector<1x128xf32>
    %240 = arith.negf %239 : vector<1x128xf32>
    %241 = math.exp %240 : vector<1x128xf32>
    %cst_55 = arith.constant 1.000000e+00 : f32
    %242 = vector.broadcast %cst_55 : f32 to vector<1x128xf32>
    %243 = arith.addf %242, %241 : vector<1x128xf32>
    %244 = arith.divf %242, %243 : vector<1x128xf32>
    %245 = vector.extract_strided_slice %244 {offsets = [0, 0], sizes = [1, 32], strides = [1, 1]} : vector<1x128xf32> to vector<1x32xf32>
    %246 = vector.extract_strided_slice %244 {offsets = [0, 32], sizes = [1, 32], strides = [1, 1]} : vector<1x128xf32> to vector<1x32xf32>
    %247 = vector.extract_strided_slice %244 {offsets = [0, 64], sizes = [1, 32], strides = [1, 1]} : vector<1x128xf32> to vector<1x32xf32>
    %cst_56 = arith.constant 2.000000e+00 : f32
    %248 = vector.broadcast %cst_56 : f32 to vector<1x32xf32>
    %249 = arith.mulf %248, %247 : vector<1x32xf32>
    %cst_57 = arith.constant 1.000000e+00 : f32
    %250 = vector.broadcast %cst_57 : f32 to vector<1x32xf32>
    %251 = arith.subf %249, %250 : vector<1x32xf32>
    %252 = vector.extract_strided_slice %244 {offsets = [0, 96], sizes = [1, 32], strides = [1, 1]} : vector<1x128xf32> to vector<1x32xf32>
    %253 = arith.mulf %246, %211 : vector<1x32xf32>
    %254 = arith.mulf %245, %251 : vector<1x32xf32>
    %255 = arith.addf %253, %254 : vector<1x32xf32>
    %256 = math.tanh %255 : vector<1x32xf32>
    %257 = arith.mulf %252, %256 : vector<1x32xf32>
    %258 = tpu.concatenate %257, %235 in 1 : vector<1x32xf32>, vector<1x32xf32> -> vector<1x64xf32>
    %259 = arith.truncf %258 : vector<1x64xf32> to vector<1x64xbf16>
    %cst_58 = arith.constant dense<0.000000e+00> : vector<1x128xf32>
    %260 = tpu.matmul %259, %2, %cst_58 {dimension_numbers = #tpu.dot_dimension_numbers<[1], [0], [0], [1], [0, 0, 1, 1], [], []>} : vector<1x64xbf16>, vector<64x128xbf16>, vector<1x128xf32> -> vector<1x128xf32>
    %261 = arith.addf %260, %5 : vector<1x128xf32>
    %262 = arith.negf %261 : vector<1x128xf32>
    %263 = math.exp %262 : vector<1x128xf32>
    %cst_59 = arith.constant 1.000000e+00 : f32
    %264 = vector.broadcast %cst_59 : f32 to vector<1x128xf32>
    %265 = arith.addf %264, %263 : vector<1x128xf32>
    %266 = arith.divf %264, %265 : vector<1x128xf32>
    %267 = vector.extract_strided_slice %266 {offsets = [0, 0], sizes = [1, 32], strides = [1, 1]} : vector<1x128xf32> to vector<1x32xf32>
    %268 = vector.extract_strided_slice %266 {offsets = [0, 32], sizes = [1, 32], strides = [1, 1]} : vector<1x128xf32> to vector<1x32xf32>
    %269 = vector.extract_strided_slice %266 {offsets = [0, 64], sizes = [1, 32], strides = [1, 1]} : vector<1x128xf32> to vector<1x32xf32>
    %cst_60 = arith.constant 2.000000e+00 : f32
    %270 = vector.broadcast %cst_60 : f32 to vector<1x32xf32>
    %271 = arith.mulf %270, %269 : vector<1x32xf32>
    %cst_61 = arith.constant 1.000000e+00 : f32
    %272 = vector.broadcast %cst_61 : f32 to vector<1x32xf32>
    %273 = arith.subf %271, %272 : vector<1x32xf32>
    %274 = vector.extract_strided_slice %266 {offsets = [0, 96], sizes = [1, 32], strides = [1, 1]} : vector<1x128xf32> to vector<1x32xf32>
    %275 = arith.mulf %268, %233 : vector<1x32xf32>
    %276 = arith.mulf %267, %273 : vector<1x32xf32>
    %277 = arith.addf %275, %276 : vector<1x32xf32>
    %278 = math.tanh %277 : vector<1x32xf32>
    %279 = arith.mulf %274, %278 : vector<1x32xf32>
    %280 = vector.extract_strided_slice %15 {offsets = [6, 0], sizes = [1, 128], strides = [1, 1]} : vector<8x128xf32> to vector<1x128xf32>
    %281 = arith.truncf %257 : vector<1x32xf32> to vector<1x32xbf16>
    %cst_62 = arith.constant dense<0.000000e+00> : vector<1x128xf32>
    %282 = tpu.matmul %281, %1, %cst_62 {dimension_numbers = #tpu.dot_dimension_numbers<[1], [0], [0], [1], [0, 0, 1, 1], [], []>} : vector<1x32xbf16>, vector<32x128xbf16>, vector<1x128xf32> -> vector<1x128xf32>
    %283 = arith.addf %280, %282 : vector<1x128xf32>
    %284 = arith.negf %283 : vector<1x128xf32>
    %285 = math.exp %284 : vector<1x128xf32>
    %cst_63 = arith.constant 1.000000e+00 : f32
    %286 = vector.broadcast %cst_63 : f32 to vector<1x128xf32>
    %287 = arith.addf %286, %285 : vector<1x128xf32>
    %288 = arith.divf %286, %287 : vector<1x128xf32>
    %289 = vector.extract_strided_slice %288 {offsets = [0, 0], sizes = [1, 32], strides = [1, 1]} : vector<1x128xf32> to vector<1x32xf32>
    %290 = vector.extract_strided_slice %288 {offsets = [0, 32], sizes = [1, 32], strides = [1, 1]} : vector<1x128xf32> to vector<1x32xf32>
    %291 = vector.extract_strided_slice %288 {offsets = [0, 64], sizes = [1, 32], strides = [1, 1]} : vector<1x128xf32> to vector<1x32xf32>
    %cst_64 = arith.constant 2.000000e+00 : f32
    %292 = vector.broadcast %cst_64 : f32 to vector<1x32xf32>
    %293 = arith.mulf %292, %291 : vector<1x32xf32>
    %cst_65 = arith.constant 1.000000e+00 : f32
    %294 = vector.broadcast %cst_65 : f32 to vector<1x32xf32>
    %295 = arith.subf %293, %294 : vector<1x32xf32>
    %296 = vector.extract_strided_slice %288 {offsets = [0, 96], sizes = [1, 32], strides = [1, 1]} : vector<1x128xf32> to vector<1x32xf32>
    %297 = arith.mulf %290, %255 : vector<1x32xf32>
    %298 = arith.mulf %289, %295 : vector<1x32xf32>
    %299 = arith.addf %297, %298 : vector<1x32xf32>
    %300 = math.tanh %299 : vector<1x32xf32>
    %301 = arith.mulf %296, %300 : vector<1x32xf32>
    %302 = tpu.concatenate %301, %279 in 1 : vector<1x32xf32>, vector<1x32xf32> -> vector<1x64xf32>
    %303 = arith.truncf %302 : vector<1x64xf32> to vector<1x64xbf16>
    %cst_66 = arith.constant dense<0.000000e+00> : vector<1x128xf32>
    %304 = tpu.matmul %303, %2, %cst_66 {dimension_numbers = #tpu.dot_dimension_numbers<[1], [0], [0], [1], [0, 0, 1, 1], [], []>} : vector<1x64xbf16>, vector<64x128xbf16>, vector<1x128xf32> -> vector<1x128xf32>
    %305 = arith.addf %304, %5 : vector<1x128xf32>
    %306 = arith.negf %305 : vector<1x128xf32>
    %307 = math.exp %306 : vector<1x128xf32>
    %cst_67 = arith.constant 1.000000e+00 : f32
    %308 = vector.broadcast %cst_67 : f32 to vector<1x128xf32>
    %309 = arith.addf %308, %307 : vector<1x128xf32>
    %310 = arith.divf %308, %309 : vector<1x128xf32>
    %311 = vector.extract_strided_slice %310 {offsets = [0, 0], sizes = [1, 32], strides = [1, 1]} : vector<1x128xf32> to vector<1x32xf32>
    %312 = vector.extract_strided_slice %310 {offsets = [0, 32], sizes = [1, 32], strides = [1, 1]} : vector<1x128xf32> to vector<1x32xf32>
    %313 = vector.extract_strided_slice %310 {offsets = [0, 64], sizes = [1, 32], strides = [1, 1]} : vector<1x128xf32> to vector<1x32xf32>
    %cst_68 = arith.constant 2.000000e+00 : f32
    %314 = vector.broadcast %cst_68 : f32 to vector<1x32xf32>
    %315 = arith.mulf %314, %313 : vector<1x32xf32>
    %cst_69 = arith.constant 1.000000e+00 : f32
    %316 = vector.broadcast %cst_69 : f32 to vector<1x32xf32>
    %317 = arith.subf %315, %316 : vector<1x32xf32>
    %318 = vector.extract_strided_slice %310 {offsets = [0, 96], sizes = [1, 32], strides = [1, 1]} : vector<1x128xf32> to vector<1x32xf32>
    %319 = arith.mulf %312, %277 : vector<1x32xf32>
    %320 = arith.mulf %311, %317 : vector<1x32xf32>
    %321 = arith.addf %319, %320 : vector<1x32xf32>
    %322 = math.tanh %321 : vector<1x32xf32>
    %323 = arith.mulf %318, %322 : vector<1x32xf32>
    %324 = vector.extract_strided_slice %15 {offsets = [7, 0], sizes = [1, 128], strides = [1, 1]} : vector<8x128xf32> to vector<1x128xf32>
    %325 = arith.truncf %301 : vector<1x32xf32> to vector<1x32xbf16>
    %cst_70 = arith.constant dense<0.000000e+00> : vector<1x128xf32>
    %326 = tpu.matmul %325, %1, %cst_70 {dimension_numbers = #tpu.dot_dimension_numbers<[1], [0], [0], [1], [0, 0, 1, 1], [], []>} : vector<1x32xbf16>, vector<32x128xbf16>, vector<1x128xf32> -> vector<1x128xf32>
    %327 = arith.addf %324, %326 : vector<1x128xf32>
    %328 = arith.negf %327 : vector<1x128xf32>
    %329 = math.exp %328 : vector<1x128xf32>
    %cst_71 = arith.constant 1.000000e+00 : f32
    %330 = vector.broadcast %cst_71 : f32 to vector<1x128xf32>
    %331 = arith.addf %330, %329 : vector<1x128xf32>
    %332 = arith.divf %330, %331 : vector<1x128xf32>
    %333 = vector.extract_strided_slice %332 {offsets = [0, 0], sizes = [1, 32], strides = [1, 1]} : vector<1x128xf32> to vector<1x32xf32>
    %334 = vector.extract_strided_slice %332 {offsets = [0, 32], sizes = [1, 32], strides = [1, 1]} : vector<1x128xf32> to vector<1x32xf32>
    %335 = vector.extract_strided_slice %332 {offsets = [0, 64], sizes = [1, 32], strides = [1, 1]} : vector<1x128xf32> to vector<1x32xf32>
    %cst_72 = arith.constant 2.000000e+00 : f32
    %336 = vector.broadcast %cst_72 : f32 to vector<1x32xf32>
    %337 = arith.mulf %336, %335 : vector<1x32xf32>
    %cst_73 = arith.constant 1.000000e+00 : f32
    %338 = vector.broadcast %cst_73 : f32 to vector<1x32xf32>
    %339 = arith.subf %337, %338 : vector<1x32xf32>
    %340 = vector.extract_strided_slice %332 {offsets = [0, 96], sizes = [1, 32], strides = [1, 1]} : vector<1x128xf32> to vector<1x32xf32>
    %341 = arith.mulf %334, %299 : vector<1x32xf32>
    %342 = arith.mulf %333, %339 : vector<1x32xf32>
    %343 = arith.addf %341, %342 : vector<1x32xf32>
    %344 = math.tanh %343 : vector<1x32xf32>
    %345 = arith.mulf %340, %344 : vector<1x32xf32>
    %346 = tpu.concatenate %345, %323 in 1 : vector<1x32xf32>, vector<1x32xf32> -> vector<1x64xf32>
    %347 = arith.truncf %346 : vector<1x64xf32> to vector<1x64xbf16>
    %cst_74 = arith.constant dense<0.000000e+00> : vector<1x128xf32>
    %348 = tpu.matmul %347, %2, %cst_74 {dimension_numbers = #tpu.dot_dimension_numbers<[1], [0], [0], [1], [0, 0, 1, 1], [], []>} : vector<1x64xbf16>, vector<64x128xbf16>, vector<1x128xf32> -> vector<1x128xf32>
    %349 = arith.addf %348, %5 : vector<1x128xf32>
    %350 = arith.negf %349 : vector<1x128xf32>
    %351 = math.exp %350 : vector<1x128xf32>
    %cst_75 = arith.constant 1.000000e+00 : f32
    %352 = vector.broadcast %cst_75 : f32 to vector<1x128xf32>
    %353 = arith.addf %352, %351 : vector<1x128xf32>
    %354 = arith.divf %352, %353 : vector<1x128xf32>
    %355 = vector.extract_strided_slice %354 {offsets = [0, 0], sizes = [1, 32], strides = [1, 1]} : vector<1x128xf32> to vector<1x32xf32>
    %356 = vector.extract_strided_slice %354 {offsets = [0, 32], sizes = [1, 32], strides = [1, 1]} : vector<1x128xf32> to vector<1x32xf32>
    %357 = vector.extract_strided_slice %354 {offsets = [0, 64], sizes = [1, 32], strides = [1, 1]} : vector<1x128xf32> to vector<1x32xf32>
    %cst_76 = arith.constant 2.000000e+00 : f32
    %358 = vector.broadcast %cst_76 : f32 to vector<1x32xf32>
    %359 = arith.mulf %358, %357 : vector<1x32xf32>
    %cst_77 = arith.constant 1.000000e+00 : f32
    %360 = vector.broadcast %cst_77 : f32 to vector<1x32xf32>
    %361 = arith.subf %359, %360 : vector<1x32xf32>
    %362 = vector.extract_strided_slice %354 {offsets = [0, 96], sizes = [1, 32], strides = [1, 1]} : vector<1x128xf32> to vector<1x32xf32>
    %363 = arith.mulf %356, %321 : vector<1x32xf32>
    %364 = arith.mulf %355, %361 : vector<1x32xf32>
    %365 = arith.addf %363, %364 : vector<1x32xf32>
    %366 = math.tanh %365 : vector<1x32xf32>
    %367 = arith.mulf %362, %366 : vector<1x32xf32>
    %368 = arith.truncf %367 : vector<1x32xf32> to vector<1x32xbf16>
    %cst_78 = arith.constant dense<0.000000e+00> : vector<1x128xf32>
    %369 = tpu.matmul %368, %3, %cst_78 {dimension_numbers = #tpu.dot_dimension_numbers<[1], [0], [0], [1], [0, 0, 1, 1], [], []>} : vector<1x32xbf16>, vector<32x128xbf16>, vector<1x128xf32> -> vector<1x128xf32>
    %370 = vector.extract_strided_slice %369 {offsets = [0, 0], sizes = [1, 10], strides = [1, 1]} : vector<1x128xf32> to vector<1x10xf32>
    %371 = arith.addf %370, %10 : vector<1x10xf32>
    %cst_79 = arith.constant dense<0xFF800000> : vector<1xf32>
    %372 = vector.multi_reduction <maximumf>, %371, %cst_79 [1] : vector<1x10xf32> to vector<1xf32>
    %373 = vector.shape_cast %372 : vector<1xf32> to vector<1x1xf32>
    %374 = vector.broadcast %373 : vector<1x1xf32> to vector<1x10xf32>
    %375 = arith.subf %371, %374 : vector<1x10xf32>
    %376 = math.exp %375 : vector<1x10xf32>
    %cst_80 = arith.constant dense<0.000000e+00> : vector<1xf32>
    %377 = vector.multi_reduction <add>, %376, %cst_80 [1] : vector<1x10xf32> to vector<1xf32>
    %378 = vector.shape_cast %377 : vector<1xf32> to vector<1x1xf32>
    %379 = vector.broadcast %378 : vector<1x1xf32> to vector<1x10xf32>
    %380 = arith.divf %376, %379 : vector<1x10xf32>
    %c0_81 = arith.constant 0 : index
    %c0_82 = arith.constant 0 : index
    %381 = vector.load %arg3[%c0_81, %c0_82] : memref<1x10xf32, #tpu.memory_space<vmem>>, vector<1x10xf32>
    tpu.vector_store %arg3[%c0_81, %c0_82], %380 {strides = array<i32>} : memref<1x10xf32, #tpu.memory_space<vmem>>, vector<1x10xf32>,
    return
  }
}

</mosaic_0001>

<bundles_post_ra>
// kernel: tpu_custom_call.1
= control target key start
LH: loop header
LB: loop body
LE: loop exit
PB: predicated region body
PF: predicated region fallthrough
CT: control target
= control target key end

     0   :  { %8 = vsyncpa [#allocation3], 0  ;;  %s1882_s0 = inlined_call_operand.hbm [shape: f32[8,16], index: 0, kind: input, shape index: {}]   ;;  %s1883_s1 = inlined_call_operand.hbm [shape: bf16[144,128], index: 1, kind: input, shape index: {}]   ;;  %s1884_s2 = inlined_call_operand.hbm [shape: f32[7,128], index: 2, kind: input, shape index: {}]   ;;  %s1885_s3 = inlined_call_operand.hbm [shape: f32[1,10], index: 3, kind: output, shape index: {}]  }
   0x1   :  { %9 = vsyncpa [#allocation6], 0  ;;  %s26_s14 = sshll.u32 %s1883_s1, 4  ;;  %s27_s14 = int_to_ptr.hbm [resolvable:$true] %s26_s14 }
   0x2   :  { %10 = vsyncpa [#allocation4], 0  ;;  %s1606_s15 = smov [#allocation5]   ;;  %s16_s19 = sshll.u32 %s1882_s0, 4  ;;  %s17_s19 = int_to_ptr.hbm [resolvable:$true] %s16_s19 }
   0x3   :  { %s28_s16 = sshll.u32 %s1606_s15, 4  ;;  %s1607_s20 = smov 64   ;;  %s29_s16 = int_to_ptr.vmem [resolvable:$true] %s28_s16 }
   0x4   :  { %s1608_s21 = smov 4   ;;  %s1609_s22 = smov [#allocation2]  }
   0x5   :  { %34 = dma.hbm_to_vmem [thread:$0]  %s27_s14, 1152, %s29_s16, [#allocation6], %s1607_s20, %s1607_s20, %s1608_s21  }
   0x6   :  { %s18_s23 = sshll.u32 %s1609_s22, 4  ;;  %s40_s1 = sshll.u32 %s1884_s2, 4  ;;  %s19_s23 = int_to_ptr.vmem [resolvable:$true] %s18_s23  ;;  %s41_s1 = int_to_ptr.hbm [resolvable:$true] %s40_s1 }
   0x7   :  { %21 = dma.hbm_to_vmem [thread:$0]  %s17_s19, 128, %s19_s23, [#allocation3]  }
   0x8   :  { %s1610_s26 = smov [#allocation7]  }
   0x9   :  { %s42_s27 = sshll.u32 %s1610_s26, 4  ;;  %s43_s27 = int_to_ptr.vmem [resolvable:$true] %s42_s27 }
   0xa   :  { %45 = dma.hbm_to_vmem [thread:$0]  %s41_s1, 128, %s43_s27, [#allocation6]  }
   0xb   :  { %1600 = dma.done.wait [#allocation3], 128  }
   0xc   :  { %1601 = vsyncadd [#allocation3], 4294967168 }
   0xd   :  { %1602 = dma.done.wait [#allocation6], 1280  }
   0xe   :  { %1603 = vsyncadd [#allocation6], 4294966016  ;;  %v1381_v0 = vld [vmem:[#allocation5] sm:$0xff]  ;;  %v1644_v1 = vld [vmem:[#allocation5 + $0x10] sm:$0xff]  ;;  %vm93_vm0 = vcmask 130048   ;;  %vm123_vm1 = vcmask 261120  }
   0xf   :  { %v84_v2 = vld [vmem:[#allocation2] sm:$0xff]  ;;  %104 = vmatpush.bf16.msra.mxu0 %v1381_v0  ;;  %133 = vmatpush.bf16.msra.mxu1 %v1644_v1  ;;  %v1647_v4 = vld [vmem:[#allocation5 + $0x8] sm:$0xff]  ;;  %s1611_s0 = smov 32   ;;  %v1667_v37 = vld [vmem:[#allocation5 + $0x30] sm:$0xff]  ;;  %vm217_vm6 = vcmask 523264   ;;  %s1612_s2 = smov [#allocation8]  }
  0x10   :  { %v85_v3 = vpack.c.bf16 %v84_v2, %v84_v2  ;;  %v79_v5 = vld [vmem:[#allocation7 + $0x2] sm:$0x1]  ;;  %289 = vmatpush.bf16.msra.mxu3 %v1644_v1  ;;  %v1402_v7 = vld [vmem:[#allocation7] ss:$0 sm:$0xff]  ;;  %v81_v29 = vld [vmem:[#allocation7 + $0x4] sm:$0x1]  ;;  %225 = vmatpush.bf16.msra.mxu2 %v1667_v37 }
  0x11   :  { %v110_v6 = vpack.c.bf16 %v79_v5, %v79_v5  ;;  %v1670_v38 = vld [vmem:[#allocation5 + $0x28] sm:$0xff]  ;;  %v1675_v39 = vld [vmem:[#allocation5 + $0x20] sm:$0xff]  ;;  %v1684_v45 = vld [vmem:[#allocation5 + $0x18] sm:$0xff]  ;;  %s1282_s28 = sshll.u32 %s1612_s2, 4  ;;  %s1284_s4 = sshll.u32 %s1885_s3, 4  ;;  %s1283_s28 = int_to_ptr.vmem [resolvable:$true] %s1282_s28  ;;  %s1285_s4 = int_to_ptr.hbm [resolvable:$true] %s1284_s4 }
  0x12   :  { %1299 = vmatmul.msk.bf16.vlgmr.msra.gmra.mxu0 %vm93_vm0, %v85_v3  ;;  %v80_v41 = vld [vmem:[#allocation7 + $0x3] sm:$0x1]  ;;  %v82_v46 = vld [vmem:[#allocation7 + $0x5] sm:$0x1]  ;;  %v1705_v53 = vld [vmem:[#allocation7 + $0x1] sm:$0x1] }
  0x13   :  { %134 = vmatpush.bf16.msra.mxu1 %v1647_v4  ;;  %362 = vmatpush.bf16.msrb.mxu0 %v1667_v37 }
  0x14   :  { %290 = vmatpush.bf16.msra.mxu3 %v1647_v4  ;;  %226 = vmatpush.bf16.msra.mxu2 %v1670_v38 }
  0x16   :  { %1308 = vmatmul.msk.bf16.vlgmr.msra.gmra.mxu1 %vm123_vm1, %v110_v6 }
  0x17   :  { %424 = vmatpush.bf16.msrb.mxu1 %v1644_v1  ;;  %363 = vmatpush.bf16.msrb.mxu0 %v1670_v38 }
  0x18   :  { %496 = vmatpush.bf16.msrb.mxu3 %v1667_v37  ;;  %227 = vmatpush.bf16.msra.mxu2 %v1675_v39 }
  0x1b   :  { %425 = vmatpush.bf16.msrb.mxu1 %v1647_v4  ;;  %364 = vmatpush.bf16.msrb.mxu0 %v1675_v39 }
  0x1c   :  { %497 = vmatpush.bf16.msrb.mxu3 %v1670_v38  ;;  %228 = vmatpush.bf16.msra.mxu2 %v1684_v45 }
  0x1f   :  { %694 = vmatpush.bf16.msra.mxu1 %v1644_v1  ;;  %365 = vmatpush.bf16.msrb.mxu0 %v1684_v45 }
  0x20   :  { %498 = vmatpush.bf16.msrb.mxu3 %v1675_v39  ;;  %557 = vmatpush.bf16.msrb.mxu2 %v1644_v1 }
  0x23   :  { %695 = vmatpush.bf16.msra.mxu1 %v1647_v4  ;;  %631 = vmatpush.bf16.msra.mxu0 %v1667_v37 }
  0x24   :  { %499 = vmatpush.bf16.msrb.mxu3 %v1684_v45  ;;  %558 = vmatpush.bf16.msrb.mxu2 %v1647_v4 }
  0x27   :  { %632 = vmatpush.bf16.msra.mxu0 %v1670_v38 }
  0x2b   :  { %633 = vmatpush.bf16.msra.mxu0 %v1675_v39 }
  0x2f   :  { %634 = vmatpush.bf16.msra.mxu0 %v1684_v45 }
  0x8f   :  { %v106_v8 = vpop.f32.mrf.mxu0 }
  0x90   :  { %v1657_v9 = vadd.f32 %v1402_v7, %v106_v8 }
  0x93   :  { %v136_v10 = vpop.f32.mrf.mxu1 }
  0x94   :  { %v140_v11 = vadd.f32 %v136_v10, %v1657_v9 }
  0x96   :  { %v1309_v12 = vmul.f32 -1.442695, %v140_v11 }
  0x97   :  { %v108_v13 = vpop.f32.mrf.mxu0 }
  0x98   :  { %1403 = vpow2.f32 %v1309_v12 }
  0x9b   :  { %v138_v14 = vpop.f32.mrf.mxu1 }
  0x9e   :  { %v1404_v15 = vpop.eup %1403 }
  0x9f   :  { %v144_v16 = vadd.f32 1.0, %v1404_v15 }
  0xa1   :  { %1405 = vrcp.f32 %v144_v16  ;;  %v156_v20 = vand.u32 2147483648, %v144_v16  ;;  %v154_v22 = vand.u32 2147483647, %v144_v16  ;;  %vm150_vm3 = vweird.f32 %v144_v16 }
  0xa3   :  { %v157_v24 = vor.u32 1.1754944e-38, %v156_v20  ;;  %vm155_vm5 = vcmp.eq.f32.partialorder %v154_v22, 8.507059e+37 }
  0xa7   :  { %v1406_v17 = vpop.eup %1405 }
  0xa8   :  { %v146_v18 = vmul.f32 %v1406_v17, %v144_v16  ;;  %vm151_vm2 = vweird.f32 %v1406_v17 }
  0xa9   :  { %vm152_vm4 = vmor %vm150_vm3, %vm151_vm2 }
  0xaa   :  { %v147_v19 = vsub.f32 1.0, %v146_v18 }
  0xac   :  { %v148_v21 = vmul.f32 %v1406_v17, %v147_v19 }
  0xae   :  { %v149_v23 = vadd.f32 %v1406_v17, %v148_v21 }
  0xb0   :  { %v153_v25 = vsel %vm152_vm4, %v1406_v17, %v149_v23 }
  0xb1   :  { %v158_v26 = vsel %vm155_vm5, %v157_v24, %v153_v25 }
  0xb2   :  { %v160_v27 = vmul.f32 2.0, %v158_v26 }
  0xb4   :  { %v1310_v28 = vadd.f32 -1.0, %v160_v27 }
  0xb6   :  { %168 = vrot.lane.b32.xlu0 %v1310_v28, %s1607_s20 }
  0xbe   :  { %163 = vrot.lane.b32.xlu0 %v81_v29, %s1611_s0 }
 0x128   :  { %v169_v30 = vpop.permute.xlu0 %168 }
 0x129   :  { %v171_v31 = vmul.f32 %v169_v30, %v158_v26 }
 0x12b   :  { %173 = vrot.lane.b32.xlu1 %v171_v31, %s1611_s0 }
 0x130   :  { %v164_v32 = vpop.permute.xlu0 %163 }
 0x131   :  { %v166_v33 = vmul.f32 %v164_v32, %v158_v26 }
 0x19d   :  { %v174_v34 = vpop.permute.xlu1 %173 }
 0x19e   :  { %v1663_v35 = vadd.f32 %v174_v34, %v166_v33 }
 0x1a0   :  { %1407 = vtanh.f32 %v1663_v35 }
 0x1a6   :  { %v1408_v36 = vpop.eup %1407 }
 0x1a7   :  { %179 = vrot.lane.b32.xlu1 %v1408_v36, %s1607_s20 }
 0x219   :  { %v180_v40 = vpop.permute.xlu1 %179 }
 0x21a   :  { %v182_v42 = vmul.f32 %v180_v40, %v158_v26 }
 0x21c   :  { %v1397_v43 = vpack.i.bf16 %v80_v41, %v182_v42  ;;  %v276_v44 = vpack.c.bf16 %v182_v42, %v182_v42  ;;  %v322_v42 = vrot.slane %v1663_v35, 7 }
 0x21e   :  { %1398 = vrot.lane.b32.xlu2 %v1397_v43, %s1611_s0 }
 0x226   :  { %278 = vrot.lane.b32.xlu2 %v276_v44, %s1611_s0 }
 0x22e   :  { %256 = vrot.lane.b32.xlu2 %v82_v46, %s1611_s0 }
 0x278   :  { %v1399_v47 = vpop.permute.xlu2 %1398 }
 0x279   :  { %v1401_v48 = vunpack.i.h.bf16 %v1399_v47  ;;  %v1400_v49 = vunpack.i.l.bf16 %v1399_v47 }
 0x27b   :  { %v191_v50 = vsel %vm123_vm1, %v1400_v49, %v1401_v48 }
 0x27c   :  { %v192_v51 = vpack.c.bf16 %v191_v50, %v191_v50 }
 0x27e   :  { %1327 = vmatmul.msk.bf16.vlgmr.msra.gmra.mxu2 %vm217_vm6, %v192_v51 }
 0x27f   :  { %827 = vmatpush.bf16.msra.mxu2 %v1644_v1 }
 0x280   :  { %v279_v52 = vpop.permute.xlu2 %278 }
 0x281   :  { %1330 = vmatmul.msk.bf16.vlgmr.msra.gmra.mxu3 %vm123_vm1, %v279_v52 }
 0x282   :  { %766 = vmatpush.bf16.msra.mxu3 %v1667_v37 }
 0x283   :  { %828 = vmatpush.bf16.msra.mxu2 %v1647_v4 }
 0x286   :  { %767 = vmatpush.bf16.msra.mxu3 %v1670_v38 }
 0x288   :  { %v257_v34 = vpop.permute.xlu2 %256 }
 0x28a   :  { %768 = vmatpush.bf16.msra.mxu3 %v1675_v39 }
 0x28e   :  { %769 = vmatpush.bf16.msra.mxu3 %v1684_v45 }
 0x301   :  { %v230_v54 = vpop.f32.mrf.mxu2 }
 0x302   :  { %v231_v55 = vadd.f32 %v230_v54, %v1705_v53 }
 0x304   :  { %v1328_v56 = vmul.f32 -1.442695, %v231_v55  ;;  %v292_v57 = vpop.f32.mrf.mxu3 }
 0x305   :  { %v297_v58 = vrot.slane %v292_v57, 7 }
 0x306   :  { %1409 = vpow2.f32 %v1328_v56 }
 0x307   :  { %v299_v59 = vadd.f32 %v297_v58, %v1657_v9 }
 0x309   :  { %v1331_v60 = vmul.f32 -1.442695, %v299_v59  ;;  %v232_v61 = vpop.f32.mrf.mxu2 }
 0x30b   :  { %1411 = vpow2.f32 %v1331_v60 }
 0x30c   :  { %v1410_v62 = vpop.eup %1409  ;;  %v294_v63 = vpop.f32.mrf.mxu3 }
 0x30d   :  { %v237_v0 = vadd.f32 1.0, %v1410_v62 }
 0x30f   :  { %1413 = vrcp.f32 %v237_v0  ;;  %v249_v8 = vand.u32 2147483648, %v237_v0  ;;  %v247_v12 = vand.u32 2147483647, %v237_v0  ;;  %vm243_vm8 = vweird.f32 %v237_v0 }
 0x311   :  { %v1412_v2 = vpop.eup %1411  ;;  %v250_v15 = vor.u32 1.1754944e-38, %v249_v8  ;;  %vm248_vm10 = vcmp.eq.f32.partialorder %v247_v12, 8.507059e+37 }
 0x312   :  { %v303_v3 = vadd.f32 1.0, %v1412_v2 }
 0x314   :  { %1415 = vrcp.f32 %v303_v3  ;;  %v315_v18 = vand.u32 2147483648, %v303_v3  ;;  %v313_v21 = vand.u32 2147483647, %v303_v3  ;;  %vm309_vm12 = vweird.f32 %v303_v3 }
 0x315   :  { %v1414_v5 = vpop.eup %1413 }
 0x316   :  { %v239_v6 = vmul.f32 %v1414_v5, %v237_v0  ;;  %vm244_vm7 = vweird.f32 %v1414_v5  ;;  %v316_v25 = vor.u32 1.1754944e-38, %v315_v18  ;;  %vm314_vm14 = vcmp.eq.f32.partialorder %v313_v21, 8.507059e+37 }
 0x317   :  { %vm245_vm9 = vmor %vm243_vm8, %vm244_vm7 }
 0x318   :  { %v240_v7 = vsub.f32 1.0, %v239_v6 }
 0x31a   :  { %v1416_v10 = vpop.eup %1415  ;;  %v241_v11 = vmul.f32 %v1414_v5, %v240_v7 }
 0x31b   :  { %v305_v13 = vmul.f32 %v1416_v10, %v303_v3  ;;  %vm310_vm11 = vweird.f32 %v1416_v10 }
 0x31c   :  { %v242_v14 = vadd.f32 %v1414_v5, %v241_v11  ;;  %vm311_vm13 = vmor %vm309_vm12, %vm310_vm11 }
 0x31d   :  { %v306_v16 = vsub.f32 1.0, %v305_v13 }
 0x31e   :  { %v246_v17 = vsel %vm245_vm9, %v1414_v5, %v242_v14 }
 0x31f   :  { %v251_v19 = vsel %vm248_vm10, %v250_v15, %v246_v17  ;;  %v307_v20 = vmul.f32 %v1416_v10, %v306_v16 }
 0x320   :  { %v253_v22 = vmul.f32 2.0, %v251_v19  ;;  %v259_v36 = vmul.f32 %v257_v34, %v251_v19 }
 0x321   :  { %v308_v23 = vadd.f32 %v1416_v10, %v307_v20 }
 0x322   :  { %v1329_v24 = vadd.f32 -1.0, %v253_v22 }
 0x323   :  { %v312_v26 = vsel %vm311_vm13, %v1416_v10, %v308_v23 }
 0x324   :  { %261 = vrot.lane.b32.xlu0 %v1329_v24, %s1607_s20  ;;  %v317_v27 = vsel %vm314_vm14, %v316_v25, %v312_v26 }
 0x325   :  { %v319_v28 = vmul.f32 2.0, %v317_v27  ;;  %v324_v43 = vmul.f32 %v322_v42, %v317_v27 }
 0x327   :  { %v1332_v29 = vadd.f32 -1.0, %v319_v28 }
 0x329   :  { %326 = vrot.lane.b32.xlu1 %v1332_v29, %s1607_s20 }
 0x396   :  { %v262_v30 = vpop.permute.xlu0 %261 }
 0x397   :  { %v264_v31 = vmul.f32 %v262_v30, %v251_v19 }
 0x399   :  { %266 = vrot.lane.b32.xlu0 %v264_v31, %s1611_s0 }
 0x39b   :  { %v327_v32 = vpop.permute.xlu1 %326 }
 0x39c   :  { %v329_v33 = vmul.f32 %v327_v32, %v317_v27 }
 0x39e   :  { %331 = vrot.lane.b32.xlu1 %v329_v33, %s1611_s0 }
 0x40b   :  { %v267_v40 = vpop.permute.xlu0 %266 }
 0x40c   :  { %v1713_v41 = vadd.f32 %v267_v40, %v259_v36 }
 0x40e   :  { %1417 = vtanh.f32 %v1713_v41 }
 0x410   :  { %v332_v44 = vpop.permute.xlu1 %331 }
 0x411   :  { %v1717_v46 = vadd.f32 %v332_v44, %v324_v43 }
 0x413   :  { %1419 = vtanh.f32 %v1717_v46 }
 0x414   :  { %v1418_v47 = vpop.eup %1417 }
 0x415   :  { %272 = vrot.lane.b32.xlu2 %v1418_v47, %s1607_s20 }
 0x419   :  { %v1420_v48 = vpop.eup %1419 }
 0x41a   :  { %337 = vrot.lane.b32.xlu0 %v1420_v48, %s1607_s20 }
 0x46f   :  { %v273_v49 = vpop.permute.xlu2 %272 }
 0x470   :  { %v275_v50 = vmul.f32 %v273_v49, %v251_v19  ;;  %v457_v49 = vrot.slane %v1717_v46, 7 }
 0x472   :  { %v346_v51 = vrot.slane %v275_v50, 7 }
 0x474   :  { %347 = vrot.lane.b32.xlu2 %v346_v51, %s1607_s20 }
 0x48c   :  { %v338_v35 = vpop.permute.xlu0 %337 }
 0x48d   :  { %v340_v52 = vmul.f32 %v338_v35, %v317_v27 }
 0x48f   :  { %v409_v54 = vpack.c.bf16 %v340_v52, %v340_v52  ;;  %342 = vrot.lane.b32.xlu1 %v340_v52, %s1611_s0 }
 0x491   :  { %v411_v55 = vshrl.u32 %v409_v54, 16 }
 0x493   :  { %413 = vrot.lane.b32.xlu0 %v411_v55, %s1611_s0 }
 0x4ce   :  { %v348_v56 = vpop.permute.xlu2 %347 }
 0x501   :  { %v343_v57 = vpop.permute.xlu1 %342 }
 0x502   :  { %v350_v58 = vsel %vm123_vm1, %v343_v57, %v348_v56 }
 0x503   :  { %v351_v59 = vpack.c.bf16 %v350_v58, %v350_v58 }
 0x505   :  { %v353_v60 = vshrl.u32 %v351_v59, 16  ;;  %v414_v61 = vpop.permute.xlu0 %413 }
 0x506   :  { %1336 = vmatmul.msk.bf16.vlgmr.msrb.gmra.mxu1 %vm123_vm1, %v414_v61 }
 0x507   :  { %1333 = vmatmul.msk.bf16.vlgmr.msrb.gmra.mxu0 %vm217_vm6, %v353_v60  ;;  %964 = vmatpush.bf16.msrb.mxu1 %v1644_v1 }
 0x508   :  { %901 = vmatpush.bf16.msrb.mxu0 %v1667_v37 }
 0x50b   :  { %965 = vmatpush.bf16.msrb.mxu1 %v1647_v4 }
 0x50c   :  { %902 = vmatpush.bf16.msrb.mxu0 %v1670_v38 }
 0x510   :  { %903 = vmatpush.bf16.msrb.mxu0 %v1675_v39 }
 0x514   :  { %904 = vmatpush.bf16.msrb.mxu0 %v1684_v45 }
 0x583   :  { %v427_v62 = vpop.f32.mrf.mxu1 }
 0x584   :  { %v432_v63 = vrot.slane %v427_v62, 6  ;;  %v367_v0 = vpop.f32.mrf.mxu0 }
 0x585   :  { %v368_v2 = vadd.f32 %v367_v0, %v1705_v53 }
 0x586   :  { %v434_v3 = vadd.f32 %v432_v63, %v1657_v9 }
 0x587   :  { %v1334_v5 = vmul.f32 -1.442695, %v368_v2 }
 0x588   :  { %v1337_v6 = vmul.f32 -1.442695, %v434_v3 }
 0x589   :  { %1421 = vpow2.f32 %v1334_v5 }
 0x58a   :  { %1423 = vpow2.f32 %v1337_v6 }
 0x58b   :  { %v429_v7 = vpop.f32.mrf.mxu1 }
 0x58c   :  { %v369_v8 = vpop.f32.mrf.mxu0 }
 0x58f   :  { %v1422_v10 = vpop.eup %1421 }
 0x590   :  { %v1424_v11 = vpop.eup %1423  ;;  %v374_v12 = vadd.f32 1.0, %v1422_v10 }
 0x591   :  { %v438_v13 = vadd.f32 1.0, %v1424_v11 }
 0x592   :  { %1425 = vrcp.f32 %v374_v12  ;;  %v386_v19 = vand.u32 2147483648, %v374_v12  ;;  %v384_v22 = vand.u32 2147483647, %v374_v12  ;;  %vm380_vm2 = vweird.f32 %v374_v12 }
 0x593   :  { %1427 = vrcp.f32 %v438_v13  ;;  %v450_v23 = vand.u32 2147483648, %v438_v13  ;;  %v448_v25 = vand.u32 2147483647, %v438_v13  ;;  %vm444_vm4 = vweird.f32 %v438_v13 }
 0x594   :  { %v387_v27 = vor.u32 1.1754944e-38, %v386_v19  ;;  %vm385_vm5 = vcmp.eq.f32.partialorder %v384_v22, 8.507059e+37 }
 0x595   :  { %v451_v30 = vor.u32 1.1754944e-38, %v450_v23  ;;  %vm449_vm8 = vcmp.eq.f32.partialorder %v448_v25, 8.507059e+37 }
 0x598   :  { %v1426_v14 = vpop.eup %1425 }
 0x599   :  { %v1428_v15 = vpop.eup %1427  ;;  %v376_v16 = vmul.f32 %v1426_v14, %v374_v12  ;;  %vm381_vm15 = vweird.f32 %v1426_v14 }
 0x59a   :  { %v440_v17 = vmul.f32 %v1428_v15, %v438_v13  ;;  %vm445_vm0 = vweird.f32 %v1428_v15  ;;  %vm382_vm3 = vmor %vm380_vm2, %vm381_vm15 }
 0x59b   :  { %v377_v18 = vsub.f32 1.0, %v376_v16  ;;  %vm446_vm7 = vmor %vm444_vm4, %vm445_vm0 }
 0x59c   :  { %v441_v20 = vsub.f32 1.0, %v440_v17 }
 0x59d   :  { %v378_v21 = vmul.f32 %v1426_v14, %v377_v18 }
 0x59e   :  { %v442_v24 = vmul.f32 %v1428_v15, %v441_v20 }
 0x59f   :  { %v379_v26 = vadd.f32 %v1426_v14, %v378_v21 }
 0x5a0   :  { %v443_v28 = vadd.f32 %v1428_v15, %v442_v24 }
 0x5a1   :  { %v383_v29 = vsel %vm382_vm3, %v1426_v14, %v379_v26 }
 0x5a2   :  { %v388_v31 = vsel %vm385_vm5, %v387_v27, %v383_v29  ;;  %v447_v32 = vsel %vm446_vm7, %v1428_v15, %v443_v28 }
 0x5a3   :  { %v390_v33 = vmul.f32 2.0, %v388_v31  ;;  %v452_v34 = vsel %vm449_vm8, %v451_v30, %v447_v32  ;;  %v392_v54 = vmul.f32 %v388_v31, %v1713_v41 }
 0x5a4   :  { %v454_v36 = vmul.f32 2.0, %v452_v34  ;;  %v459_v50 = vmul.f32 %v457_v49, %v452_v34 }
 0x5a5   :  { %v1335_v40 = vadd.f32 -1.0, %v390_v33 }
 0x5a6   :  { %v1338_v42 = vadd.f32 -1.0, %v454_v36 }
 0x5a7   :  { %394 = vrot.lane.b32.xlu1 %v1335_v40, %s1607_s20 }
 0x5a8   :  { %461 = vrot.lane.b32.xlu2 %v1338_v42, %s1607_s20 }
 0x602   :  { %v462_v43 = vpop.permute.xlu2 %461 }
 0x603   :  { %v464_v44 = vmul.f32 %v462_v43, %v452_v34 }
 0x605   :  { %466 = vrot.lane.b32.xlu1 %v464_v44, %s1611_s0 }
 0x619   :  { %v395_v47 = vpop.permute.xlu1 %394 }
 0x61a   :  { %v397_v48 = vmul.f32 %v395_v47, %v388_v31 }
 0x61c   :  { %399 = vrot.lane.b32.xlu0 %v397_v48, %s1611_s0 }
 0x677   :  { %v467_v51 = vpop.permute.xlu1 %466 }
 0x678   :  { %v1741_v35 = vadd.f32 %v467_v51, %v459_v50 }
 0x67a   :  { %1429 = vtanh.f32 %v1741_v35 }
 0x680   :  { %v1430_v52 = vpop.eup %1429 }
 0x681   :  { %472 = vrot.lane.b32.xlu0 %v1430_v52, %s1607_s20 }
 0x68e   :  { %v400_v55 = vpop.permute.xlu0 %399 }
 0x68f   :  { %v1746_v56 = vadd.f32 %v400_v55, %v392_v54  ;;  %v590_v55 = vrot.slane %v1741_v35, 7 }
 0x691   :  { %1431 = vtanh.f32 %v1746_v56 }
 0x697   :  { %v1432_v57 = vpop.eup %1431 }
 0x698   :  { %405 = vrot.lane.b32.xlu2 %v1432_v57, %s1607_s20 }
 0x6f2   :  { %v406_v46 = vpop.permute.xlu2 %405 }
 0x6f3   :  { %v408_v58 = vmul.f32 %v406_v46, %v388_v31  ;;  %v473_v59 = vpop.permute.xlu0 %472 }
 0x6f4   :  { %v475_v60 = vmul.f32 %v473_v59, %v452_v34 }
 0x6f5   :  { %v481_v61 = vrot.slane %v408_v58, 6 }
 0x6f6   :  { %v543_v62 = vpack.c.bf16 %v475_v60, %v475_v60  ;;  %477 = vrot.lane.b32.xlu1 %v475_v60, %s1611_s0 }
 0x6f7   :  { %482 = vrot.lane.b32.xlu2 %v481_v61, %s1607_s20 }
 0x6f8   :  { %v545_v63 = vrot.slane %v543_v62, 1 }
 0x6fa   :  { %546 = vrot.lane.b32.xlu0 %v545_v63, %s1611_s0 }
 0x751   :  { %v483_v41 = vpop.permute.xlu2 %482 }
 0x768   :  { %v478_v0 = vpop.permute.xlu1 %477 }
 0x769   :  { %v485_v2 = vsel %vm123_vm1, %v478_v0, %v483_v41 }
 0x76a   :  { %v486_v3 = vpack.c.bf16 %v485_v2, %v485_v2 }
 0x76c   :  { %v488_v5 = vrot.slane %v486_v3, 1  ;;  %v547_v6 = vpop.permute.xlu0 %546 }
 0x76d   :  { %1342 = vmatmul.msk.bf16.vlgmr.msrb.gmra.mxu2 %vm123_vm1, %v547_v6 }
 0x76e   :  { %1339 = vmatmul.msk.bf16.vlgmr.msrb.gmra.mxu3 %vm217_vm6, %v488_v5  ;;  %1097 = vmatpush.bf16.msrb.mxu2 %v1644_v1 }
 0x76f   :  { %1036 = vmatpush.bf16.msrb.mxu3 %v1667_v37 }
 0x772   :  { %1098 = vmatpush.bf16.msrb.mxu2 %v1647_v4 }
 0x773   :  { %1037 = vmatpush.bf16.msrb.mxu3 %v1670_v38 }
 0x777   :  { %1038 = vmatpush.bf16.msrb.mxu3 %v1675_v39 }
 0x77b   :  { %1039 = vmatpush.bf16.msrb.mxu3 %v1684_v45 }
 0x7f0   :  { %v560_v7 = vpop.f32.mrf.mxu2 }
 0x7f1   :  { %v565_v8 = vrot.slane %v560_v7, 5  ;;  %v501_v10 = vpop.f32.mrf.mxu3 }
 0x7f2   :  { %v502_v11 = vadd.f32 %v501_v10, %v1705_v53 }
 0x7f3   :  { %v567_v12 = vadd.f32 %v565_v8, %v1657_v9 }
 0x7f4   :  { %v1340_v13 = vmul.f32 -1.442695, %v502_v11 }
 0x7f5   :  { %v1343_v14 = vmul.f32 -1.442695, %v567_v12 }
 0x7f6   :  { %1433 = vpow2.f32 %v1340_v13 }
 0x7f7   :  { %1435 = vpow2.f32 %v1343_v14 }
 0x7f8   :  { %v562_v1 = vpop.f32.mrf.mxu2 }
 0x7f9   :  { %v503_v15 = vpop.f32.mrf.mxu3 }
 0x7fc   :  { %v1434_v4 = vpop.eup %1433 }
 0x7fd   :  { %v1436_v16 = vpop.eup %1435  ;;  %v508_v17 = vadd.f32 1.0, %v1434_v4 }
 0x7fe   :  { %v571_v18 = vadd.f32 1.0, %v1436_v16 }
 0x7ff   :  { %1437 = vrcp.f32 %v508_v17  ;;  %v520_v24 = vand.u32 2147483648, %v508_v17  ;;  %v518_v27 = vand.u32 2147483647, %v508_v17  ;;  %vm514_vm11 = vweird.f32 %v508_v17 }
 0x800   :  { %1439 = vrcp.f32 %v571_v18  ;;  %v583_v28 = vand.u32 2147483648, %v571_v18  ;;  %v581_v30 = vand.u32 2147483647, %v571_v18  ;;  %vm577_vm13 = vweird.f32 %v571_v18 }
 0x801   :  { %v521_v32 = vor.u32 1.1754944e-38, %v520_v24  ;;  %vm519_vm14 = vcmp.eq.f32.partialorder %v518_v27, 8.507059e+37 }
 0x802   :  { %v584_v36 = vor.u32 1.1754944e-38, %v583_v28  ;;  %vm582_vm0 = vcmp.eq.f32.partialorder %v581_v30, 8.507059e+37 }
 0x805   :  { %v1438_v19 = vpop.eup %1437 }
 0x806   :  { %v1440_v20 = vpop.eup %1439  ;;  %v510_v21 = vmul.f32 %v1438_v19, %v508_v17  ;;  %vm515_vm9 = vweird.f32 %v1438_v19 }
 0x807   :  { %v573_v22 = vmul.f32 %v1440_v20, %v571_v18  ;;  %vm578_vm10 = vweird.f32 %v1440_v20  ;;  %vm516_vm12 = vmor %vm514_vm11, %vm515_vm9 }
 0x808   :  { %v511_v23 = vsub.f32 1.0, %v510_v21  ;;  %vm579_vm15 = vmor %vm577_vm13, %vm578_vm10 }
 0x809   :  { %v574_v25 = vsub.f32 1.0, %v573_v22 }
 0x80a   :  { %v512_v26 = vmul.f32 %v1438_v19, %v511_v23 }
 0x80b   :  { %v575_v29 = vmul.f32 %v1440_v20, %v574_v25 }
 0x80c   :  { %v513_v31 = vadd.f32 %v1438_v19, %v512_v26 }
 0x80d   :  { %v576_v33 = vadd.f32 %v1440_v20, %v575_v29 }
 0x80e   :  { %v517_v34 = vsel %vm516_vm12, %v1438_v19, %v513_v31 }
 0x80f   :  { %v522_v40 = vsel %vm519_vm14, %v521_v32, %v517_v34  ;;  %v580_v42 = vsel %vm579_vm15, %v1440_v20, %v576_v33 }
 0x810   :  { %v524_v43 = vmul.f32 2.0, %v522_v40  ;;  %v585_v44 = vsel %vm582_vm0, %v584_v36, %v580_v42  ;;  %v526_v60 = vmul.f32 %v522_v40, %v1746_v56 }
 0x811   :  { %v587_v47 = vmul.f32 2.0, %v585_v44  ;;  %v592_v57 = vmul.f32 %v590_v55, %v585_v44 }
 0x812   :  { %v1341_v48 = vadd.f32 -1.0, %v524_v43 }
 0x813   :  { %v1344_v49 = vadd.f32 -1.0, %v587_v47 }
 0x814   :  { %528 = vrot.lane.b32.xlu1 %v1341_v48, %s1607_s20 }
 0x815   :  { %594 = vrot.lane.b32.xlu2 %v1344_v49, %s1607_s20 }
 0x86f   :  { %v595_v50 = vpop.permute.xlu2 %594 }
 0x870   :  { %v597_v51 = vmul.f32 %v595_v50, %v585_v44 }
 0x872   :  { %599 = vrot.lane.b32.xlu1 %v597_v51, %s1611_s0 }
 0x886   :  { %v529_v52 = vpop.permute.xlu1 %528 }
 0x887   :  { %v531_v54 = vmul.f32 %v529_v52, %v522_v40 }
 0x889   :  { %533 = vrot.lane.b32.xlu0 %v531_v54, %s1611_s0 }
 0x8e4   :  { %v600_v46 = vpop.permute.xlu1 %599 }
 0x8e5   :  { %v1769_v58 = vadd.f32 %v600_v46, %v592_v57 }
 0x8e7   :  { %1441 = vtanh.f32 %v1769_v58 }
 0x8ed   :  { %v1442_v59 = vpop.eup %1441 }
 0x8ee   :  { %605 = vrot.lane.b32.xlu0 %v1442_v59, %s1607_s20  ;;  %v727_v59 = vrot.slane %v1769_v58, 7 }
 0x8fb   :  { %v534_v61 = vpop.permute.xlu0 %533 }
 0x8fc   :  { %v1774_v62 = vadd.f32 %v534_v61, %v526_v60 }
 0x8fe   :  { %1443 = vtanh.f32 %v1774_v62 }
 0x904   :  { %v1444_v63 = vpop.eup %1443 }
 0x905   :  { %539 = vrot.lane.b32.xlu2 %v1444_v63, %s1607_s20 }
 0x95f   :  { %v540_v35 = vpop.permute.xlu2 %539 }
 0x960   :  { %v542_v41 = vmul.f32 %v540_v35, %v522_v40  ;;  %v606_v0 = vpop.permute.xlu0 %605 }
 0x961   :  { %v608_v2 = vmul.f32 %v606_v0, %v585_v44 }
 0x962   :  { %v614_v3 = vrot.slane %v542_v41, 5 }
 0x963   :  { %v678_v5 = vpack.c.bf16 %v608_v2, %v608_v2  ;;  %610 = vrot.lane.b32.xlu1 %v608_v2, %s1611_s0 }
 0x964   :  { %615 = vrot.lane.b32.xlu2 %v614_v3, %s1607_s20 }
 0x965   :  { %v680_v6 = vshrl.u32 %v678_v5, 16 }
 0x967   :  { %v682_v56 = vrot.slane %v680_v6, 1 }
 0x969   :  { %683 = vrot.lane.b32.xlu0 %v682_v56, %s1611_s0 }
 0x9be   :  { %v616_v7 = vpop.permute.xlu2 %615 }
 0x9d5   :  { %v611_v8 = vpop.permute.xlu1 %610 }
 0x9d6   :  { %v618_v10 = vsel %vm123_vm1, %v611_v8, %v616_v7 }
 0x9d7   :  { %v619_v11 = vpack.c.bf16 %v618_v10, %v618_v10 }
 0x9d9   :  { %v621_v12 = vshrl.u32 %v619_v11, 16 }
 0x9db   :  { %v623_v13 = vrot.slane %v621_v12, 1  ;;  %v684_v14 = vpop.permute.xlu0 %683 }
 0x9dc   :  { %1348 = vmatmul.msk.bf16.vlgmr.msra.gmra.mxu1 %vm123_vm1, %v684_v14 }
 0x9dd   :  { %1345 = vmatmul.msk.bf16.vlgmr.msra.gmra.mxu0 %vm217_vm6, %v623_v13 }
 0x9de   :  { %1171 = vmatpush.bf16.msra.mxu0 %v1667_v37 }
 0x9e2   :  { %1172 = vmatpush.bf16.msra.mxu0 %v1670_v38 }
 0x9e6   :  { %1173 = vmatpush.bf16.msra.mxu0 %v1675_v39 }
 0x9ea   :  { %1174 = vmatpush.bf16.msra.mxu0 %v1684_v45 }
 0xa59   :  { %v697_v1 = vpop.f32.mrf.mxu1 }
 0xa5a   :  { %v702_v15 = vrot.slane %v697_v1, 4  ;;  %v636_v4 = vpop.f32.mrf.mxu0 }
 0xa5b   :  { %v637_v16 = vadd.f32 %v636_v4, %v1705_v53 }
 0xa5c   :  { %v704_v17 = vadd.f32 %v702_v15, %v1657_v9 }
 0xa5d   :  { %v1346_v18 = vmul.f32 -1.442695, %v637_v16 }
 0xa5e   :  { %v1349_v19 = vmul.f32 -1.442695, %v704_v17 }
 0xa5f   :  { %1445 = vpow2.f32 %v1346_v18 }
 0xa60   :  { %1447 = vpow2.f32 %v1349_v19 }
 0xa61   :  { %v699_v20 = vpop.f32.mrf.mxu1 }
 0xa62   :  { %v638_v21 = vpop.f32.mrf.mxu0 }
 0xa65   :  { %v1446_v37 = vpop.eup %1445 }
 0xa66   :  { %v1448_v22 = vpop.eup %1447  ;;  %v643_v38 = vadd.f32 1.0, %v1446_v37 }
 0xa67   :  { %v708_v23 = vadd.f32 1.0, %v1448_v22 }
 0xa68   :  { %1449 = vrcp.f32 %v643_v38  ;;  %v655_v27 = vand.u32 2147483648, %v643_v38  ;;  %v653_v30 = vand.u32 2147483647, %v643_v38  ;;  %vm649_vm4 = vweird.f32 %v643_v38 }
 0xa69   :  { %1451 = vrcp.f32 %v708_v23  ;;  %v720_v31 = vand.u32 2147483648, %v708_v23  ;;  %v718_v33 = vand.u32 2147483647, %v708_v23  ;;  %vm714_vm7 = vweird.f32 %v708_v23 }
 0xa6a   :  { %v656_v36 = vor.u32 1.1754944e-38, %v655_v27  ;;  %vm654_vm8 = vcmp.eq.f32.partialorder %v653_v30, 8.507059e+37 }
 0xa6b   :  { %v721_v43 = vor.u32 1.1754944e-38, %v720_v31  ;;  %vm719_vm10 = vcmp.eq.f32.partialorder %v718_v33, 8.507059e+37 }
 0xa6e   :  { %v1450_v39 = vpop.eup %1449 }
 0xa6f   :  { %v1452_v45 = vpop.eup %1451  ;;  %v645_v24 = vmul.f32 %v1450_v39, %v643_v38  ;;  %vm650_vm2 = vweird.f32 %v1450_v39 }
 0xa70   :  { %v710_v25 = vmul.f32 %v1452_v45, %v708_v23  ;;  %vm715_vm3 = vweird.f32 %v1452_v45  ;;  %vm651_vm5 = vmor %vm649_vm4, %vm650_vm2 }
 0xa71   :  { %v646_v26 = vsub.f32 1.0, %v645_v24  ;;  %vm716_vm9 = vmor %vm714_vm7, %vm715_vm3 }
 0xa72   :  { %v711_v28 = vsub.f32 1.0, %v710_v25 }
 0xa73   :  { %v647_v29 = vmul.f32 %v1450_v39, %v646_v26 }
 0xa74   :  { %v712_v32 = vmul.f32 %v1452_v45, %v711_v28 }
 0xa75   :  { %v648_v34 = vadd.f32 %v1450_v39, %v647_v29 }
 0xa76   :  { %v713_v40 = vadd.f32 %v1452_v45, %v712_v32 }
 0xa77   :  { %v652_v42 = vsel %vm651_vm5, %v1450_v39, %v648_v34 }
 0xa78   :  { %v657_v44 = vsel %vm654_vm8, %v656_v36, %v652_v42  ;;  %v717_v47 = vsel %vm716_vm9, %v1452_v45, %v713_v40 }
 0xa79   :  { %v659_v48 = vmul.f32 2.0, %v657_v44  ;;  %v722_v49 = vsel %vm719_vm10, %v721_v43, %v717_v47  ;;  %v661_v41 = vmul.f32 %v657_v44, %v1774_v62 }
 0xa7a   :  { %v724_v50 = vmul.f32 2.0, %v722_v49  ;;  %v729_v60 = vmul.f32 %v727_v59, %v722_v49 }
 0xa7b   :  { %v1347_v51 = vadd.f32 -1.0, %v659_v48 }
 0xa7c   :  { %v1350_v52 = vadd.f32 -1.0, %v724_v50 }
 0xa7d   :  { %663 = vrot.lane.b32.xlu1 %v1347_v51, %s1607_s20 }
 0xa7e   :  { %731 = vrot.lane.b32.xlu2 %v1350_v52, %s1607_s20 }
 0xad8   :  { %v732_v54 = vpop.permute.xlu2 %731 }
 0xad9   :  { %v734_v55 = vmul.f32 %v732_v54, %v722_v49 }
 0xadb   :  { %736 = vrot.lane.b32.xlu1 %v734_v55, %s1611_s0 }
 0xaef   :  { %v664_v57 = vpop.permute.xlu1 %663 }
 0xaf0   :  { %v666_v46 = vmul.f32 %v664_v57, %v657_v44 }
 0xaf2   :  { %668 = vrot.lane.b32.xlu0 %v666_v46, %s1611_s0 }
 0xb4d   :  { %v737_v61 = vpop.permute.xlu1 %736 }
 0xb4e   :  { %v1795_v63 = vadd.f32 %v737_v61, %v729_v60 }
 0xb50   :  { %1453 = vtanh.f32 %v1795_v63  ;;  %v860_v60 = vrot.slane %v1795_v63, 7 }
 0xb56   :  { %v1454_v35 = vpop.eup %1453 }
 0xb57   :  { %742 = vrot.lane.b32.xlu0 %v1454_v35, %s1607_s20 }
 0xb64   :  { %v669_v0 = vpop.permute.xlu0 %668 }
 0xb65   :  { %v1800_v2 = vadd.f32 %v669_v0, %v661_v41 }
 0xb67   :  { %1455 = vtanh.f32 %v1800_v2 }
 0xb6d   :  { %v1456_v3 = vpop.eup %1455 }
 0xb6e   :  { %674 = vrot.lane.b32.xlu2 %v1456_v3, %s1607_s20 }
 0xbc8   :  { %v675_v58 = vpop.permute.xlu2 %674 }
 0xbc9   :  { %v677_v5 = vmul.f32 %v675_v58, %v657_v44  ;;  %v743_v6 = vpop.permute.xlu0 %742 }
 0xbca   :  { %v745_v56 = vmul.f32 %v743_v6, %v722_v49 }
 0xbcb   :  { %v751_v7 = vrot.slane %v677_v5, 4 }
 0xbcc   :  { %v813_v8 = vpack.c.bf16 %v745_v56, %v745_v56  ;;  %747 = vrot.lane.b32.xlu1 %v745_v56, %s1611_s0 }
 0xbcd   :  { %752 = vrot.lane.b32.xlu2 %v751_v7, %s1607_s20 }
 0xbce   :  { %v815_v10 = vrot.slane %v813_v8, 2 }
 0xbd0   :  { %816 = vrot.lane.b32.xlu0 %v815_v10, %s1611_s0 }
 0xc27   :  { %v753_v62 = vpop.permute.xlu2 %752 }
 0xc3e   :  { %v748_v11 = vpop.permute.xlu1 %747 }
 0xc3f   :  { %v755_v12 = vsel %vm123_vm1, %v748_v11, %v753_v62 }
 0xc40   :  { %v756_v13 = vpack.c.bf16 %v755_v12, %v755_v12 }
 0xc42   :  { %v758_v14 = vrot.slane %v756_v13, 2  ;;  %v817_v1 = vpop.permute.xlu0 %816 }
 0xc43   :  { %1354 = vmatmul.msk.bf16.vlgmr.msra.gmra.mxu2 %vm123_vm1, %v817_v1 }
 0xc44   :  { %1351 = vmatmul.msk.bf16.vlgmr.msra.gmra.mxu3 %vm217_vm6, %v758_v14 }
 0xcc6   :  { %v830_v15 = vpop.f32.mrf.mxu2 }
 0xcc7   :  { %v835_v4 = vrot.slane %v830_v15, 3  ;;  %v771_v16 = vpop.f32.mrf.mxu3 }
 0xcc8   :  { %v772_v17 = vadd.f32 %v771_v16, %v1705_v53 }
 0xcc9   :  { %v837_v18 = vadd.f32 %v835_v4, %v1657_v9 }
 0xcca   :  { %v1352_v19 = vmul.f32 -1.442695, %v772_v17 }
 0xccb   :  { %v1355_v20 = vmul.f32 -1.442695, %v837_v18 }
 0xccc   :  { %1457 = vpow2.f32 %v1352_v19 }
 0xccd   :  { %1459 = vpow2.f32 %v1355_v20 }
 0xcce   :  { %v832_v21 = vpop.f32.mrf.mxu2 }
 0xccf   :  { %v773_v37 = vpop.f32.mrf.mxu3 }
 0xcd2   :  { %v1458_v22 = vpop.eup %1457 }
 0xcd3   :  { %v1460_v38 = vpop.eup %1459  ;;  %v778_v23 = vadd.f32 1.0, %v1458_v22 }
 0xcd4   :  { %v841_v39 = vadd.f32 1.0, %v1460_v38 }
 0xcd5   :  { %1461 = vrcp.f32 %v778_v23  ;;  %v790_v28 = vand.u32 2147483648, %v778_v23  ;;  %v788_v31 = vand.u32 2147483647, %v778_v23  ;;  %vm784_vm13 = vweird.f32 %v778_v23 }
 0xcd6   :  { %1463 = vrcp.f32 %v841_v39  ;;  %v853_v32 = vand.u32 2147483648, %v841_v39  ;;  %v851_v34 = vand.u32 2147483647, %v841_v39  ;;  %vm847_vm15 = vweird.f32 %v841_v39 }
 0xcd7   :  { %v791_v40 = vor.u32 1.1754944e-38, %v790_v28  ;;  %vm789_vm0 = vcmp.eq.f32.partialorder %v788_v31, 8.507059e+37 }
 0xcd8   :  { %v854_v44 = vor.u32 1.1754944e-38, %v853_v32  ;;  %vm852_vm3 = vcmp.eq.f32.partialorder %v851_v34, 8.507059e+37 }
 0xcdb   :  { %v1462_v45 = vpop.eup %1461 }
 0xcdc   :  { %v1464_v24 = vpop.eup %1463  ;;  %v780_v25 = vmul.f32 %v1462_v45, %v778_v23  ;;  %vm785_vm11 = vweird.f32 %v1462_v45 }
 0xcdd   :  { %v843_v26 = vmul.f32 %v1464_v24, %v841_v39  ;;  %vm848_vm12 = vweird.f32 %v1464_v24  ;;  %vm786_vm14 = vmor %vm784_vm13, %vm785_vm11 }
 0xcde   :  { %v781_v27 = vsub.f32 1.0, %v780_v25  ;;  %vm849_vm2 = vmor %vm847_vm15, %vm848_vm12 }
 0xcdf   :  { %v844_v29 = vsub.f32 1.0, %v843_v26 }
 0xce0   :  { %v782_v30 = vmul.f32 %v1462_v45, %v781_v27 }
 0xce1   :  { %v845_v33 = vmul.f32 %v1464_v24, %v844_v29 }
 0xce2   :  { %v783_v36 = vadd.f32 %v1462_v45, %v782_v30 }
 0xce3   :  { %v846_v42 = vadd.f32 %v1464_v24, %v845_v33 }
 0xce4   :  { %v787_v43 = vsel %vm786_vm14, %v1462_v45, %v783_v36 }
 0xce5   :  { %v792_v47 = vsel %vm789_vm0, %v791_v40, %v787_v43  ;;  %v850_v48 = vsel %vm849_vm2, %v1464_v24, %v846_v42 }
 0xce6   :  { %v794_v49 = vmul.f32 2.0, %v792_v47  ;;  %v855_v50 = vsel %vm852_vm3, %v854_v44, %v850_v48  ;;  %v796_v3 = vmul.f32 %v792_v47, %v1800_v2 }
 0xce7   :  { %v857_v51 = vmul.f32 2.0, %v855_v50  ;;  %v862_v61 = vmul.f32 %v860_v60, %v855_v50 }
 0xce8   :  { %v1353_v52 = vadd.f32 -1.0, %v794_v49 }
 0xce9   :  { %v1356_v54 = vadd.f32 -1.0, %v857_v51 }
 0xcea   :  { %798 = vrot.lane.b32.xlu1 %v1353_v52, %s1607_s20 }
 0xceb   :  { %864 = vrot.lane.b32.xlu2 %v1356_v54, %s1607_s20 }
 0xd45   :  { %v865_v55 = vpop.permute.xlu2 %864 }
 0xd46   :  { %v867_v57 = vmul.f32 %v865_v55, %v855_v50 }
 0xd48   :  { %869 = vrot.lane.b32.xlu1 %v867_v57, %s1611_s0 }
 0xd5c   :  { %v799_v46 = vpop.permute.xlu1 %798 }
 0xd5d   :  { %v801_v59 = vmul.f32 %v799_v46, %v792_v47 }
 0xd5f   :  { %803 = vrot.lane.b32.xlu0 %v801_v59, %s1611_s0 }
 0xdba   :  { %v870_v35 = vpop.permute.xlu1 %869 }
 0xdbb   :  { %v1817_v41 = vadd.f32 %v870_v35, %v862_v61 }
 0xdbd   :  { %1465 = vtanh.f32 %v1817_v41  ;;  %v997_v35 = vrot.slane %v1817_v41, 7 }
 0xdc3   :  { %v1466_v0 = vpop.eup %1465 }
 0xdc4   :  { %875 = vrot.lane.b32.xlu0 %v1466_v0, %s1607_s20 }
 0xdd1   :  { %v804_v58 = vpop.permute.xlu0 %803 }
 0xdd2   :  { %v1822_v5 = vadd.f32 %v804_v58, %v796_v3 }
 0xdd4   :  { %1467 = vtanh.f32 %v1822_v5 }
 0xdda   :  { %v1468_v6 = vpop.eup %1467 }
 0xddb   :  { %809 = vrot.lane.b32.xlu2 %v1468_v6, %s1607_s20 }
 0xe35   :  { %v810_v63 = vpop.permute.xlu2 %809 }
 0xe36   :  { %v812_v56 = vmul.f32 %v810_v63, %v792_v47  ;;  %v876_v7 = vpop.permute.xlu0 %875 }
 0xe37   :  { %v878_v8 = vmul.f32 %v876_v7, %v855_v50 }
 0xe38   :  { %v884_v10 = vrot.slane %v812_v56, 3 }
 0xe39   :  { %v948_v62 = vpack.c.bf16 %v878_v8, %v878_v8  ;;  %880 = vrot.lane.b32.xlu1 %v878_v8, %s1611_s0 }
 0xe3a   :  { %885 = vrot.lane.b32.xlu2 %v884_v10, %s1607_s20 }
 0xe3b   :  { %v950_v11 = vshrl.u32 %v948_v62, 16 }
 0xe3d   :  { %v952_v2 = vrot.slane %v950_v11, 2 }
 0xe3f   :  { %953 = vrot.lane.b32.xlu0 %v952_v2, %s1611_s0 }
 0xe94   :  { %v886_v12 = vpop.permute.xlu2 %885 }
 0xeab   :  { %v881_v13 = vpop.permute.xlu1 %880 }
 0xeac   :  { %v888_v14 = vsel %vm123_vm1, %v881_v13, %v886_v12 }
 0xead   :  { %v889_v1 = vpack.c.bf16 %v888_v14, %v888_v14 }
 0xeaf   :  { %v891_v15 = vshrl.u32 %v889_v1, 16 }
 0xeb1   :  { %v893_v4 = vrot.slane %v891_v15, 2  ;;  %v954_v16 = vpop.permute.xlu0 %953 }
 0xeb2   :  { %1360 = vmatmul.msk.bf16.vlgmr.msrb.gmra.mxu1 %vm123_vm1, %v954_v16 }
 0xeb3   :  { %1357 = vmatmul.msk.bf16.vlgmr.msrb.gmra.mxu0 %vm217_vm6, %v893_v4 }
 0xf2f   :  { %v967_v17 = vpop.f32.mrf.mxu1 }
 0xf30   :  { %v972_v18 = vrot.slane %v967_v17, 2  ;;  %v906_v19 = vpop.f32.mrf.mxu0 }
 0xf31   :  { %v907_v20 = vadd.f32 %v906_v19, %v1705_v53 }
 0xf32   :  { %v974_v21 = vadd.f32 %v972_v18, %v1657_v9 }
 0xf33   :  { %v1358_v37 = vmul.f32 -1.442695, %v907_v20  ;;  %v1854_v20 = vld [vmem:[#allocation7 + $0x1] sm:$0x1] }
 0xf34   :  { %v1361_v22 = vmul.f32 -1.442695, %v974_v21 }
 0xf35   :  { %1469 = vpow2.f32 %v1358_v37 }
 0xf36   :  { %1471 = vpow2.f32 %v1361_v22 }
 0xf37   :  { %v969_v38 = vpop.f32.mrf.mxu1 }
 0xf38   :  { %v908_v23 = vpop.f32.mrf.mxu0 }
 0xf3b   :  { %v1470_v39 = vpop.eup %1469 }
 0xf3c   :  { %v1472_v45 = vpop.eup %1471  ;;  %v913_v24 = vadd.f32 1.0, %v1470_v39 }
 0xf3d   :  { %v978_v25 = vadd.f32 1.0, %v1472_v45 }
 0xf3e   :  { %1473 = vrcp.f32 %v913_v24  ;;  %v925_v53 = vand.u32 2147483648, %v913_v24  ;;  %v923_v33 = vand.u32 2147483647, %v913_v24  ;;  %vm919_vm7 = vweird.f32 %v913_v24 }
 0xf3f   :  { %1475 = vrcp.f32 %v978_v25  ;;  %v990_v34 = vand.u32 2147483648, %v978_v25  ;;  %v988_v40 = vand.u32 2147483647, %v978_v25  ;;  %vm984_vm9 = vweird.f32 %v978_v25 }
 0xf40   :  { %v926_v43 = vor.u32 1.1754944e-38, %v925_v53  ;;  %vm924_vm10 = vcmp.eq.f32.partialorder %v923_v33, 8.507059e+37 }
 0xf41   :  { %v991_v48 = vor.u32 1.1754944e-38, %v990_v34  ;;  %vm989_vm12 = vcmp.eq.f32.partialorder %v988_v40, 8.507059e+37 }
 0xf44   :  { %v1474_v26 = vpop.eup %1473 }
 0xf45   :  { %v1476_v27 = vpop.eup %1475  ;;  %v915_v28 = vmul.f32 %v1474_v26, %v913_v24  ;;  %vm920_vm4 = vweird.f32 %v1474_v26 }
 0xf46   :  { %v980_v29 = vmul.f32 %v1476_v27, %v978_v25  ;;  %vm985_vm5 = vweird.f32 %v1476_v27  ;;  %vm921_vm8 = vmor %vm919_vm7, %vm920_vm4 }
 0xf47   :  { %v916_v30 = vsub.f32 1.0, %v915_v28  ;;  %vm986_vm11 = vmor %vm984_vm9, %vm985_vm5 }
 0xf48   :  { %v981_v31 = vsub.f32 1.0, %v980_v29 }
 0xf49   :  { %v917_v32 = vmul.f32 %v1474_v26, %v916_v30 }
 0xf4a   :  { %v982_v36 = vmul.f32 %v1476_v27, %v981_v31 }
 0xf4b   :  { %v918_v42 = vadd.f32 %v1474_v26, %v917_v32 }
 0xf4c   :  { %v983_v44 = vadd.f32 %v1476_v27, %v982_v36 }
 0xf4d   :  { %v922_v47 = vsel %vm921_vm8, %v1474_v26, %v918_v42 }
 0xf4e   :  { %v927_v49 = vsel %vm924_vm10, %v926_v43, %v922_v47  ;;  %v987_v50 = vsel %vm986_vm11, %v1476_v27, %v983_v44  ;;  %vm1251_vm10 = vcmask 73728  }
 0xf4f   :  { %v929_v51 = vmul.f32 2.0, %v927_v49  ;;  %v992_v52 = vsel %vm989_vm12, %v991_v48, %v987_v50  ;;  %v931_v63 = vmul.f32 %v927_v49, %v1822_v5 }
 0xf50   :  { %v994_v54 = vmul.f32 2.0, %v992_v52  ;;  %v999_v0 = vmul.f32 %v997_v35, %v992_v52 }
 0xf51   :  { %v1359_v55 = vadd.f32 -1.0, %v929_v51 }
 0xf52   :  { %v1362_v57 = vadd.f32 -1.0, %v994_v54 }
 0xf53   :  { %933 = vrot.lane.b32.xlu1 %v1359_v55, %s1607_s20 }
 0xf54   :  { %1001 = vrot.lane.b32.xlu2 %v1362_v57, %s1607_s20 }
 0xfae   :  { %v1002_v46 = vpop.permute.xlu2 %1001 }
 0xfaf   :  { %v1004_v59 = vmul.f32 %v1002_v46, %v992_v52 }
 0xfb1   :  { %1006 = vrot.lane.b32.xlu1 %v1004_v59, %s1611_s0 }
 0xfc5   :  { %v934_v60 = vpop.permute.xlu1 %933 }
 0xfc6   :  { %v936_v61 = vmul.f32 %v934_v60, %v927_v49 }
 0xfc8   :  { %938 = vrot.lane.b32.xlu0 %v936_v61, %s1611_s0 }
0x1023   :  { %v1007_v3 = vpop.permute.xlu1 %1006 }
0x1024   :  { %v1839_v58 = vadd.f32 %v1007_v3, %v999_v0 }
0x1026   :  { %1477 = vtanh.f32 %v1839_v58  ;;  %v1130_v35 = vrot.slane %v1839_v58, 7 }
0x102c   :  { %v1478_v6 = vpop.eup %1477 }
0x102d   :  { %1012 = vrot.lane.b32.xlu0 %v1478_v6, %s1607_s20 }
0x103a   :  { %v939_v56 = vpop.permute.xlu0 %938 }
0x103b   :  { %v1844_v7 = vadd.f32 %v939_v56, %v931_v63 }
0x103d   :  { %1479 = vtanh.f32 %v1844_v7 }
0x1043   :  { %v1480_v8 = vpop.eup %1479 }
0x1044   :  { %944 = vrot.lane.b32.xlu2 %v1480_v8, %s1607_s20 }
0x109e   :  { %v945_v41 = vpop.permute.xlu2 %944 }
0x109f   :  { %v947_v10 = vmul.f32 %v945_v41, %v927_v49  ;;  %v1013_v62 = vpop.permute.xlu0 %1012 }
0x10a0   :  { %v1015_v11 = vmul.f32 %v1013_v62, %v992_v52 }
0x10a1   :  { %v1021_v2 = vrot.slane %v947_v10, 2 }
0x10a2   :  { %v1083_v12 = vpack.c.bf16 %v1015_v11, %v1015_v11  ;;  %1017 = vrot.lane.b32.xlu1 %v1015_v11, %s1611_s0 }
0x10a3   :  { %1022 = vrot.lane.b32.xlu2 %v1021_v2, %s1607_s20 }
0x10a4   :  { %v1085_v13 = vrot.slane %v1083_v12, 3 }
0x10a6   :  { %1086 = vrot.lane.b32.xlu0 %v1085_v13, %s1611_s0 }
0x10fd   :  { %v1023_v5 = vpop.permute.xlu2 %1022 }
0x1114   :  { %v1018_v14 = vpop.permute.xlu1 %1017 }
0x1115   :  { %v1025_v1 = vsel %vm123_vm1, %v1018_v14, %v1023_v5 }
0x1116   :  { %v1026_v15 = vpack.c.bf16 %v1025_v1, %v1025_v1 }
0x1118   :  { %v1028_v4 = vrot.slane %v1026_v15, 3  ;;  %v1087_v16 = vpop.permute.xlu0 %1086 }
0x1119   :  { %1366 = vmatmul.msk.bf16.vlgmr.msrb.gmra.mxu2 %vm123_vm1, %v1087_v16 }
0x111a   :  { %1363 = vmatmul.msk.bf16.vlgmr.msrb.gmra.mxu3 %vm217_vm6, %v1028_v4 }
0x119c   :  { %v1100_v17 = vpop.f32.mrf.mxu2 }
0x119d   :  { %v1105_v18 = vrot.slane %v1100_v17, 1  ;;  %v1041_v19 = vpop.f32.mrf.mxu3 }
0x119e   :  { %v1042_v21 = vadd.f32 %v1854_v20, %v1041_v19 }
0x119f   :  { %v1107_v37 = vadd.f32 %v1105_v18, %v1657_v9 }
0x11a0   :  { %v1364_v22 = vmul.f32 -1.442695, %v1042_v21 }
0x11a1   :  { %v1367_v38 = vmul.f32 -1.442695, %v1107_v37 }
0x11a2   :  { %1481 = vpow2.f32 %v1364_v22 }
0x11a3   :  { %1483 = vpow2.f32 %v1367_v38 }
0x11a4   :  { %v1102_v23 = vpop.f32.mrf.mxu2 }
0x11a5   :  { %v1043_v39 = vpop.f32.mrf.mxu3 }
0x11a8   :  { %v1482_v45 = vpop.eup %1481 }
0x11a9   :  { %v1484_v24 = vpop.eup %1483  ;;  %v1048_v25 = vadd.f32 1.0, %v1482_v45 }
0x11aa   :  { %v1111_v26 = vadd.f32 1.0, %v1484_v24 }
0x11ab   :  { %1485 = vrcp.f32 %v1048_v25  ;;  %v1060_v31 = vand.u32 2147483648, %v1048_v25  ;;  %v1058_v33 = vand.u32 2147483647, %v1048_v25  ;;  %vm1054_vm15 = vweird.f32 %v1048_v25 }
0x11ac   :  { %1487 = vrcp.f32 %v1111_v26  ;;  %v1123_v34 = vand.u32 2147483648, %v1111_v26  ;;  %v1121_v40 = vand.u32 2147483647, %v1111_v26  ;;  %vm1117_vm2 = vweird.f32 %v1111_v26 }
0x11ad   :  { %v1061_v43 = vor.u32 1.1754944e-38, %v1060_v31  ;;  %vm1059_vm3 = vcmp.eq.f32.partialorder %v1058_v33, 8.507059e+37  ;;  %v1389_v33 = vld [vmem:[#allocation5 + $0x40] sm:$0xff] }
0x11ae   :  { %v1124_v48 = vor.u32 1.1754944e-38, %v1123_v34  ;;  %vm1122_vm5 = vcmp.eq.f32.partialorder %v1121_v40, 8.507059e+37  ;;  %1243 = vmatpush.bf16.msra.mxu1 %v1389_v33  ;;  %v1388_v34 = vld [vmem:[#allocation5 + $0x38] sm:$0xff] }
0x11b1   :  { %v1486_v27 = vpop.eup %1485 }
0x11b2   :  { %v1488_v28 = vpop.eup %1487  ;;  %v1050_v29 = vmul.f32 %v1486_v27, %v1048_v25  ;;  %vm1055_vm13 = vweird.f32 %v1486_v27  ;;  %1244 = vmatpush.bf16.msra.mxu1 %v1388_v34 }
0x11b3   :  { %v1113_v30 = vmul.f32 %v1488_v28, %v1111_v26  ;;  %vm1118_vm14 = vweird.f32 %v1488_v28  ;;  %vm1056_vm0 = vmor %vm1054_vm15, %vm1055_vm13 }
0x11b4   :  { %v1051_v53 = vsub.f32 1.0, %v1050_v29  ;;  %vm1119_vm4 = vmor %vm1117_vm2, %vm1118_vm14 }
0x11b5   :  { %v1114_v32 = vsub.f32 1.0, %v1113_v30 }
0x11b6   :  { %v1052_v9 = vmul.f32 %v1486_v27, %v1051_v53 }
0x11b7   :  { %v1115_v36 = vmul.f32 %v1488_v28, %v1114_v32 }
0x11b8   :  { %v1053_v42 = vadd.f32 %v1486_v27, %v1052_v9 }
0x11b9   :  { %v1116_v44 = vadd.f32 %v1488_v28, %v1115_v36 }
0x11ba   :  { %v1057_v47 = vsel %vm1056_vm0, %v1486_v27, %v1053_v42 }
0x11bb   :  { %v1062_v49 = vsel %vm1059_vm3, %v1061_v43, %v1057_v47  ;;  %v1120_v50 = vsel %vm1119_vm4, %v1488_v28, %v1116_v44  ;;  %v83_v44 = vld [vmem:[#allocation7 + $0x6] sm:$0x1] }
0x11bc   :  { %v1064_v51 = vmul.f32 2.0, %v1062_v49  ;;  %v1125_v52 = vsel %vm1122_vm5, %v1124_v48, %v1120_v50  ;;  %v1066_v56 = vmul.f32 %v1062_v49, %v1844_v7 }
0x11bd   :  { %v1127_v54 = vmul.f32 2.0, %v1125_v52  ;;  %v1132_v0 = vmul.f32 %v1130_v35, %v1125_v52 }
0x11be   :  { %v1365_v55 = vadd.f32 -1.0, %v1064_v51 }
0x11bf   :  { %v1368_v57 = vadd.f32 -1.0, %v1127_v54 }
0x11c0   :  { %1068 = vrot.lane.b32.xlu1 %v1365_v55, %s1607_s20 }
0x11c1   :  { %1134 = vrot.lane.b32.xlu2 %v1368_v57, %s1607_s20 }
0x121b   :  { %v1135_v46 = vpop.permute.xlu2 %1134 }
0x121c   :  { %v1137_v59 = vmul.f32 %v1135_v46, %v1125_v52 }
0x121e   :  { %1139 = vrot.lane.b32.xlu1 %v1137_v59, %s1611_s0 }
0x1232   :  { %v1069_v60 = vpop.permute.xlu1 %1068 }
0x1233   :  { %v1071_v61 = vmul.f32 %v1069_v60, %v1062_v49 }
0x1235   :  { %1073 = vrot.lane.b32.xlu0 %v1071_v61, %s1611_s0 }
0x1290   :  { %v1140_v3 = vpop.permute.xlu1 %1139 }
0x1291   :  { %v1142_v6 = vadd.f32 %v1140_v3, %v1132_v0 }
0x1293   :  { %1489 = vtanh.f32 %v1142_v6 }
0x1299   :  { %v1490_v63 = vpop.eup %1489 }
0x129a   :  { %1145 = vrot.lane.b32.xlu0 %v1490_v63, %s1607_s20 }
0x12a7   :  { %v1074_v8 = vpop.permute.xlu0 %1073 }
0x12a8   :  { %v1076_v41 = vadd.f32 %v1074_v8, %v1066_v56 }
0x12aa   :  { %1491 = vtanh.f32 %v1076_v41 }
0x12b0   :  { %v1492_v10 = vpop.eup %1491 }
0x12b1   :  { %1079 = vrot.lane.b32.xlu2 %v1492_v10, %s1607_s20 }
0x130b   :  { %v1080_v62 = vpop.permute.xlu2 %1079 }
0x130c   :  { %v1082_v11 = vmul.f32 %v1080_v62, %v1062_v49  ;;  %v1146_v2 = vpop.permute.xlu0 %1145 }
0x130d   :  { %v1148_v12 = vmul.f32 %v1146_v2, %v1125_v52 }
0x130e   :  { %v1154_v58 = vrot.slane %v1082_v11, 1 }
0x130f   :  { %1150 = vrot.lane.b32.xlu1 %v1148_v12, %s1611_s0 }
0x1310   :  { %1155 = vrot.lane.b32.xlu2 %v1154_v58, %s1607_s20 }
0x136a   :  { %v1156_v13 = vpop.permute.xlu2 %1155 }
0x1381   :  { %v1151_v5 = vpop.permute.xlu1 %1150 }
0x1382   :  { %v1158_v14 = vsel %vm123_vm1, %v1151_v5, %v1156_v13 }
0x1383   :  { %v1159_v7 = vpack.c.bf16 %v1158_v14, %v1158_v14 }
0x1385   :  { %v1161_v1 = vshrl.u32 %v1159_v7, 16 }
0x1387   :  { %v1163_v15 = vrot.slane %v1161_v1, 3 }
0x1389   :  { %1369 = vmatmul.msk.bf16.vlgmr.msra.gmra.mxu0 %vm217_vm6, %v1163_v15 }
0x1406   :  { %v1176_v4 = vpop.f32.mrf.mxu0 }
0x1407   :  { %v1177_v16 = vadd.f32 %v1854_v20, %v1176_v4 }
0x1409   :  { %v1370_v17 = vmul.f32 -1.442695, %v1177_v16 }
0x140b   :  { %1493 = vpow2.f32 %v1370_v17 }
0x140e   :  { %v1178_v18 = vpop.f32.mrf.mxu0 }
0x1411   :  { %v1494_v19 = vpop.eup %1493 }
0x1412   :  { %v1183_v21 = vadd.f32 1.0, %v1494_v19 }
0x1414   :  { %1495 = vrcp.f32 %v1183_v21  ;;  %v1195_v23 = vand.u32 2147483648, %v1183_v21  ;;  %v1193_v45 = vand.u32 2147483647, %v1183_v21  ;;  %vm1189_vm8 = vweird.f32 %v1183_v21 }
0x1416   :  { %v1196_v25 = vor.u32 1.1754944e-38, %v1195_v23  ;;  %vm1194_vm6 = vcmp.eq.f32.partialorder %v1193_v45, 8.507059e+37 }
0x141a   :  { %v1496_v37 = vpop.eup %1495 }
0x141b   :  { %v1185_v22 = vmul.f32 %v1496_v37, %v1183_v21  ;;  %vm1190_vm7 = vweird.f32 %v1496_v37 }
0x141c   :  { %vm1191_vm9 = vmor %vm1189_vm8, %vm1190_vm7 }
0x141d   :  { %v1186_v38 = vsub.f32 1.0, %v1185_v22 }
0x141f   :  { %v1187_v39 = vmul.f32 %v1496_v37, %v1186_v38 }
0x1421   :  { %v1188_v24 = vadd.f32 %v1496_v37, %v1187_v39 }
0x1423   :  { %v1192_v26 = vsel %vm1191_vm9, %v1496_v37, %v1188_v24 }
0x1424   :  { %v1197_v20 = vsel %vm1194_vm6, %v1196_v25, %v1192_v26 }
0x1425   :  { %v1199_v27 = vmul.f32 2.0, %v1197_v20  ;;  %v1201_v53 = vmul.f32 %v1197_v20, %v1076_v41 }
0x1427   :  { %v1371_v28 = vadd.f32 -1.0, %v1199_v27 }
0x1429   :  { %1203 = vrot.lane.b32.xlu0 %v1371_v28, %s1607_s20 }
0x149b   :  { %v1204_v29 = vpop.permute.xlu0 %1203 }
0x149c   :  { %v1206_v30 = vmul.f32 %v1204_v29, %v1197_v20 }
0x149e   :  { %1208 = vrot.lane.b32.xlu1 %v1206_v30, %s1611_s0 }
0x1510   :  { %v1209_v31 = vpop.permute.xlu1 %1208 }
0x1511   :  { %v1211_v32 = vadd.f32 %v1209_v31, %v1201_v53 }
0x1513   :  { %1497 = vtanh.f32 %v1211_v32 }
0x1519   :  { %v1498_v9 = vpop.eup %1497 }
0x151a   :  { %1214 = vrot.lane.b32.xlu2 %v1498_v9, %s1607_s20 }
0x1574   :  { %v1215_v36 = vpop.permute.xlu2 %1214 }
0x1575   :  { %v1217_v40 = vmul.f32 %v1215_v36, %v1197_v20 }
0x1577   :  { %v1218_v42 = vpack.c.bf16 %v1217_v40, %v1217_v40 }
0x1579   :  { %1220 = vrot.lane.b32.xlu0 %v1218_v42, %s1611_s0 }
0x15eb   :  { %v1221_v43 = vpop.permute.xlu0 %1220 }
0x15ec   :  { %1380 = vmatmul.msk.bf16.vlgmr.msra.gmra.mxu1 %vm123_vm1, %v1221_v43 }
0x1669   :  { %v1246_v47 = vpop.f32.mrf.mxu1 }
0x166a   :  { %v1250_v48 = vadd.f32 %v1246_v47, %v83_v44 }
0x166c   :  { %v1252_v49 = vsel %vm1251_vm10, %v1250_v48, -inf }
0x166d   :  { %1253 = vmax.xlane.f32.xlu1 %v1252_v49 }
0x1671   :  { %v1248_v50 = vpop.f32.mrf.mxu1 }
0x16e0   :  { %v1254_v51 = vpop.xlane.xlu1 %1253 }
0x16e1   :  { %v1255_v52 = vsub.f32 %v1250_v48, %v1254_v51 }
0x16e3   :  { %v1256_v54 = vmul.f32 1.442695, %v1255_v52 }
0x16e5   :  { %1499 = vpow2.f32 %v1256_v54 }
0x16eb   :  { %v1500_v55 = vpop.eup %1499 }
0x16ec   :  { %v1258_v57 = vsel %vm1251_vm10, %v1500_v55, 0.0 }
0x16ed   :  { %1259 = vadd.xlane.f32.xlu2 %v1258_v57 }
0x1760   :  { %v1260_v46 = vpop.xlane.xlu2 %1259 }
0x1761   :  { %1501 = vrcp.f32 %v1260_v46  ;;  %v1272_v35 = vand.u32 2147483648, %v1260_v46  ;;  %v1270_v3 = vand.u32 2147483647, %v1260_v46  ;;  %vm1266_vm11 = vweird.f32 %v1260_v46 }
0x1763   :  { %v1273_v63 = vor.u32 1.1754944e-38, %v1272_v35  ;;  %vm1271_vm13 = vcmp.eq.f32.partialorder %v1270_v3, 8.507059e+37 }
0x1767   :  { %v1502_v59 = vpop.eup %1501 }
0x1768   :  { %v1262_v60 = vmul.f32 %v1502_v59, %v1260_v46  ;;  %vm1267_vm1 = vweird.f32 %v1502_v59 }
0x1769   :  { %vm1268_vm12 = vmor %vm1266_vm11, %vm1267_vm1 }
0x176a   :  { %v1263_v61 = vsub.f32 1.0, %v1262_v60 }
0x176c   :  { %v1264_v0 = vmul.f32 %v1502_v59, %v1263_v61 }
0x176e   :  { %v1265_v6 = vadd.f32 %v1502_v59, %v1264_v0 }
0x1770   :  { %v1269_v56 = vsel %vm1268_vm12, %v1502_v59, %v1265_v6 }
0x1771   :  { %v1274_v8 = vsel %vm1271_vm13, %v1273_v63, %v1269_v56 }
0x1772   :  { %v1275_v41 = vmul.f32 %v1500_v55, %v1274_v8 }
0x1774   :  { %1276 = vst.msk [vmem:[#allocation8] sm:$0x1] %vm1251_vm10, %v1275_v41 }
0x1775   :  { %1287 = dma.vmem_to_hbm [thread:$0]  %s1283_s28, 16, %s1285_s4, [#allocation4]  }
0x1776   :  { %1604 = dma.done.wait [#allocation4], 16  }
0x1777   :  { %1605 = vsyncadd [#allocation4], 4294967280 }
0x1778   :  { %1292 = vsyncpa [#allocation3], 1 }
0x1779   :  { %1293 = vsyncpa [#allocation6], 1 }
0x177a   :  { %1294 = vsyncpa [#allocation4], 1 }

</bundles_post_ra>
